<compile_context>
chip_gen: v7x
topology: tpu7x:2x2x1
jax: 0.10.0
libtpu: 0.0.40
codegen_flags: <defaults>
</compile_context>

<pallas_src>
import functools

import jax
import jax.numpy as jnp
from jax import lax
from jax.experimental import pallas as pl
from jax.experimental.pallas import tpu as pltpu

K = 4        # kernel size
STRIDE = 2
PAD = 1

# Fold taps+channels into one contraction only when the im2col pieces are wide
# enough that the lane-concat is cheaper than the extra tiny MXU pushes.
_FOLD_TAPS_MIN_CIN = 32


def _upsample_kernel(x_ref, w_ref, b_ref, o_ref):
    """One (batch, H-block) tile of the 4-phase transposed conv.

    x_ref: (Ht+2, W+2, Cin)   input tile incl. 1-px zero halo on all sides
    w_ref: (9, Cin, 4*Cout)   folded weights, tap-major (u*3 + v)
    b_ref: (1, 4*Cout)        bias replicated over the 4 phases
    o_ref: (Ht*W, 4*Cout)     phase-packed output rows, (p, q) row-major
    """
    htp2, wp2, cin = x_ref.shape
    ht, w = htp2 - 2, wp2 - 2
    rows = ht * w
    n4cout = o_ref.shape[-1]

    x = x_ref[...]
    # The 9 shifted views of the 3x3 neighbourhood shared by all 4 phases.
    taps = []
    for u in range(3):
        for v in range(3):
            taps.append(x[u:u + ht, v:v + w, :].reshape(rows, cin))

    if cin >= _FOLD_TAPS_MIN_CIN:
        # Folded contraction: one (rows, 9*Cin) @ (9*Cin, 4*Cout) MXU matmul.
        patch = jnp.concatenate(taps, axis=-1)              # (rows, 9*Cin)
        w2 = w_ref[...].reshape(9 * cin, n4cout)
        acc = jnp.dot(patch, w2, preferred_element_type=jnp.float32)
    else:
        # Tiny Cin (e.g. C=4 test): per-tap accumulation, phases still fused
        # into the 4*Cout output width.  acc (rows, 4*Cout) stays in vregs.
        acc = jnp.zeros((rows, n4cout), jnp.float32)
        for t in range(9):
            acc = acc + jnp.dot(taps[t], w_ref[t],
                                preferred_element_type=jnp.float32)

    acc = acc + b_ref[...].astype(jnp.float32)
    o_ref[...] = acc.astype(o_ref.dtype)


def _fold_weights(weight_t):
    """PyTorch ConvTranspose2d weight (Cin, Cout, 4, 4) -> (9, Cin, 4*Cout).

    Row block (u*3 + v) is the weight applied to offset (u, v) of the 3x3
    neighbourhood of the zero-padded input; column (ph*2 + pw)*Cout + co is
    output phase (ph, pw) = (oh % 2, ow % 2) and channel co.  Each phase uses
    4 of the 9 offsets (kh = 3 - ph - 2*dr, kw = 3 - pw - 2*dc); the rest
    stay zero.
    """
    cin, cout = weight_t.shape[:2]
    wbig = jnp.zeros((3, 3, cin, 2, 2, cout), weight_t.dtype)
    for ph in range(2):
        for pw in range(2):
            for dr in range(2):
                for dc in range(2):
                    u, v = ph + dr, pw + dc
                    kh, kw = 3 - ph - 2 * dr, 3 - pw - 2 * dc
                    wbig = wbig.at[u, v, :, ph, pw, :].set(weight_t[:, :, kh, kw])
    return wbig.reshape(9, cin, 4 * cout)


def _pick_block_rows(h, w, target_rows):
    """Largest divisor Ht of H with Ht*W <= target_rows (falls back to 1)."""
    best = 1
    for ht in range(1, h + 1):
        if h % ht == 0 and ht * w <= target_rows:
            best = ht
    return best


@functools.partial(jax.jit, static_argnames=("target_rows",))
def upsample_conv_transpose(x_nchw, weight_t, bias, *, target_rows=512):
    """Forward of nn.ConvTranspose2d(C, C, kernel_size=4, stride=2, padding=1).

    x_nchw  : (N, C, H, W)
    weight_t: (Cin, Cout, 4, 4)   PyTorch ConvTranspose2d weight layout
    bias    : (Cout,)
    returns : (N, Cout, 2H, 2W)
    """
    n, cin, h, w = x_nchw.shape
    cout = weight_t.shape[1]

    ht = _pick_block_rows(h, w, target_rows)
    nh = h // ht

    # NCHW -> NHWC so channels sit on the lane axis of the contraction.
    x_nhwc = jnp.transpose(x_nchw, (0, 2, 3, 1))
    # 1-px zero halo (replaces the old 4.2x zero-inserted buffer).
    xpad = jnp.pad(x_nhwc, ((0, 0), (1, 1), (1, 1), (0, 0)))

    # Overlapping H-blocks with a 2-row halo so BlockSpec blocks stay disjoint.
    if nh == 1:
        xblk = xpad[:, None]                                   # (N,1,H+2,W+2,C)
    else:
        row_ids = (jnp.arange(nh) * ht)[:, None] + jnp.arange(ht + 2)[None, :]
        xblk = xpad[:, row_ids]                                # (N,nH,Ht+2,W+2,C)

    w_fold = _fold_weights(weight_t)                           # (9, Cin, 4*Cout)
    b_pack = jnp.tile(bias, 4).reshape(1, 4 * cout)            # phase-packed bias

    out_packed = pl.pallas_call(
        _upsample_kernel,
        out_shape=jax.ShapeDtypeStruct((n, nh, ht * w, 4 * cout), x_nchw.dtype),
        grid_spec=pltpu.PrefetchScalarGridSpec(
            num_scalar_prefetch=0,
            grid=(n, nh),
            in_specs=[
                pl.BlockSpec((pl.Squeezed(), pl.Squeezed(), ht + 2, w + 2, cin),
                             lambda b, i: (b, i, 0, 0, 0)),
                pl.BlockSpec((9, cin, 4 * cout), lambda b, i: (0, 0, 0)),
                pl.BlockSpec((1, 4 * cout), lambda b, i: (0, 0)),
            ],
            out_specs=pl.BlockSpec(
                (pl.Squeezed(), pl.Squeezed(), ht * w, 4 * cout),
                lambda b, i: (b, i, 0, 0)),
        ),
        compiler_params=pltpu.CompilerParams(
            dimension_semantics=("parallel", "parallel"),
            vmem_limit_bytes=32 * 1024 * 1024),
    )(xblk, w_fold, b_pack)

    # Pixel shuffle back to NCHW: (N,nH,Ht*W,4*Cout) -> (N,H,W,ph,pw,Cout)
    # (free reshape) -> one output-sized transpose -> (N, Cout, 2H, 2W).
    out6 = out_packed.reshape(n, h, w, 2, 2, cout)
    out = jnp.transpose(out6, (0, 5, 1, 3, 2, 4)).reshape(n, cout, 2 * h, 2 * w)
    return out


def _reference(x_nchw, weight_t, bias):
    # Pure-JAX reference: transposed conv == lhs-dilated conv with flipped,
    # channel-transposed kernel.
    w_conv = jnp.transpose(weight_t[:, :, ::-1, ::-1], (1, 0, 2, 3))  # (Cout,Cin,K,K)
    y = lax.conv_general_dilated(
        x_nchw, w_conv,
        window_strides=(1, 1),
        padding=[(K - PAD - 1, K - PAD - 1)] * 2,
        lhs_dilation=(STRIDE, STRIDE),
        dimension_numbers=("NCHW", "OIHW", "NCHW"))
    return y + bias[None, :, None, None]


if __name__ == "__main__":
    N, C, H, W = 2, 4, 16, 16
    key = jax.random.PRNGKey(0)
    kx, kw_, kb = jax.random.split(key, 3)

    x = jax.random.normal(kx, (N, C, H, W), jnp.float32)
    bound = 1.0 / jnp.sqrt(jnp.float32(C * K * K))
    weight_t = jax.random.uniform(kw_, (C, C, K, K), jnp.float32, -bound, bound)
    bias = jax.random.uniform(kb, (C,), jnp.float32, -bound, bound)

    ref = jax.block_until_ready(_reference(x, weight_t, bias))

    # Default tiling (whole image per H-block at this toy size).
    out_a = jax.block_until_ready(upsample_conv_transpose(x, weight_t, bias))
    # Small target_rows to also exercise the multi-H-block (halo) path.
    out_b = jax.block_until_ready(
        upsample_conv_transpose(x, weight_t, bias, target_rows=128))

    for out in (out_a, out_b):
        assert out.shape == (N, C, 2 * H, 2 * W), out.shape
        err = float(jnp.max(jnp.abs(out - ref)))
        assert jnp.allclose(out, ref, atol=1e-5, rtol=1e-5), err

    print("KERNEL_OK")
</pallas_src>

<mosaic_0001>
module attributes {stable_mosaic.version = 11 : i64} {
  func.func @_upsample_kernel(%arg0: i32, %arg1: i32, %arg2: memref<1x1x18x18x4xf32, #tpu.memory_space<vmem>>, %arg3: memref<9x4x16xf32, #tpu.memory_space<vmem>>, %arg4: memref<1x16xf32, #tpu.memory_space<vmem>>, %arg5: memref<1x1x256x16xf32, #tpu.memory_space<vmem>>) attributes {dimension_semantics = [#tpu.dimension_semantics<parallel>, #tpu.dimension_semantics<parallel>], iteration_bounds = array<i64: 2, 1>, scalar_prefetch = 0 : i64, scratch_operands = 0 : i64, tpu.core_type = #tpu.core_type<tc>, window_params = [{transform_indices = @transform_0, window_bounds = array<i64: 1, 1, 18, 18, 4>}, {pipeline_mode = #tpu.pipeline_mode<synchronous>, transform_indices = @transform_1, window_bounds = array<i64: 9, 4, 16>}, {pipeline_mode = #tpu.pipeline_mode<synchronous>, transform_indices = @transform_2, window_bounds = array<i64: 1, 16>}, {transform_indices = @transform_3, window_bounds = array<i64: 1, 1, 256, 16>}]} {
    %c0 = arith.constant 0 : index
    %c0_0 = arith.constant 0 : index
    %c0_1 = arith.constant 0 : index
    %c0_2 = arith.constant 0 : index
    %c0_3 = arith.constant 0 : index
    %0 = vector.load %arg2[%c0, %c0_0, %c0_1, %c0_2, %c0_3] : memref<1x1x18x18x4xf32, #tpu.memory_space<vmem>>, vector<1x1x18x18x4xf32>
    %1 = vector.shape_cast %0 : vector<1x1x18x18x4xf32> to vector<18x18x4xf32>
    %2 = vector.extract_strided_slice %1 {offsets = [0, 0, 0], sizes = [16, 16, 4], strides = [1, 1, 1]} : vector<18x18x4xf32> to vector<16x16x4xf32>
    %3 = vector.shape_cast %2 : vector<16x16x4xf32> to vector<256x4xf32>
    %4 = vector.extract_strided_slice %1 {offsets = [0, 1, 0], sizes = [16, 16, 4], strides = [1, 1, 1]} : vector<18x18x4xf32> to vector<16x16x4xf32>
    %5 = vector.shape_cast %4 : vector<16x16x4xf32> to vector<256x4xf32>
    %6 = vector.extract_strided_slice %1 {offsets = [0, 2, 0], sizes = [16, 16, 4], strides = [1, 1, 1]} : vector<18x18x4xf32> to vector<16x16x4xf32>
    %7 = vector.shape_cast %6 : vector<16x16x4xf32> to vector<256x4xf32>
    %8 = vector.extract_strided_slice %1 {offsets = [1, 0, 0], sizes = [16, 16, 4], strides = [1, 1, 1]} : vector<18x18x4xf32> to vector<16x16x4xf32>
    %9 = vector.shape_cast %8 : vector<16x16x4xf32> to vector<256x4xf32>
    %10 = vector.extract_strided_slice %1 {offsets = [1, 1, 0], sizes = [16, 16, 4], strides = [1, 1, 1]} : vector<18x18x4xf32> to vector<16x16x4xf32>
    %11 = vector.shape_cast %10 : vector<16x16x4xf32> to vector<256x4xf32>
    %12 = vector.extract_strided_slice %1 {offsets = [1, 2, 0], sizes = [16, 16, 4], strides = [1, 1, 1]} : vector<18x18x4xf32> to vector<16x16x4xf32>
    %13 = vector.shape_cast %12 : vector<16x16x4xf32> to vector<256x4xf32>
    %14 = vector.extract_strided_slice %1 {offsets = [2, 0, 0], sizes = [16, 16, 4], strides = [1, 1, 1]} : vector<18x18x4xf32> to vector<16x16x4xf32>
    %15 = vector.shape_cast %14 : vector<16x16x4xf32> to vector<256x4xf32>
    %16 = vector.extract_strided_slice %1 {offsets = [2, 1, 0], sizes = [16, 16, 4], strides = [1, 1, 1]} : vector<18x18x4xf32> to vector<16x16x4xf32>
    %17 = vector.shape_cast %16 : vector<16x16x4xf32> to vector<256x4xf32>
    %18 = vector.extract_strided_slice %1 {offsets = [2, 2, 0], sizes = [16, 16, 4], strides = [1, 1, 1]} : vector<18x18x4xf32> to vector<16x16x4xf32>
    %19 = vector.shape_cast %18 : vector<16x16x4xf32> to vector<256x4xf32>
    %cst = arith.constant 0.000000e+00 : f32
    %20 = vector.broadcast %cst : f32 to vector<256x16xf32>
    %c0_4 = arith.constant 0 : index
    %c0_5 = arith.constant 0 : index
    %c0_6 = arith.constant 0 : index
    %21 = vector.load %arg3[%c0_4, %c0_5, %c0_6] : memref<9x4x16xf32, #tpu.memory_space<vmem>>, vector<1x4x16xf32>
    %22 = vector.shape_cast %21 : vector<1x4x16xf32> to vector<4x16xf32>
    %cst_7 = arith.constant dense<0.000000e+00> : vector<256x16xf32>
    %23 = tpu.matmul %3, %22, %cst_7 {dimension_numbers = #tpu.dot_dimension_numbers<[1], [0], [0], [1], [0, 0, 1, 1], [], []>} : vector<256x4xf32>, vector<4x16xf32>, vector<256x16xf32> -> vector<256x16xf32>
    %24 = arith.addf %20, %23 : vector<256x16xf32>
    %c1 = arith.constant 1 : index
    %c0_8 = arith.constant 0 : index
    %c0_9 = arith.constant 0 : index
    %25 = vector.load %arg3[%c1, %c0_8, %c0_9] : memref<9x4x16xf32, #tpu.memory_space<vmem>>, vector<1x4x16xf32>
    %26 = vector.shape_cast %25 : vector<1x4x16xf32> to vector<4x16xf32>
    %cst_10 = arith.constant dense<0.000000e+00> : vector<256x16xf32>
    %27 = tpu.matmul %5, %26, %cst_10 {dimension_numbers = #tpu.dot_dimension_numbers<[1], [0], [0], [1], [0, 0, 1, 1], [], []>} : vector<256x4xf32>, vector<4x16xf32>, vector<256x16xf32> -> vector<256x16xf32>
    %28 = arith.addf %24, %27 : vector<256x16xf32>
    %c2 = arith.constant 2 : index
    %c0_11 = arith.constant 0 : index
    %c0_12 = arith.constant 0 : index
    %29 = vector.load %arg3[%c2, %c0_11, %c0_12] : memref<9x4x16xf32, #tpu.memory_space<vmem>>, vector<1x4x16xf32>
    %30 = vector.shape_cast %29 : vector<1x4x16xf32> to vector<4x16xf32>
    %cst_13 = arith.constant dense<0.000000e+00> : vector<256x16xf32>
    %31 = tpu.matmul %7, %30, %cst_13 {dimension_numbers = #tpu.dot_dimension_numbers<[1], [0], [0], [1], [0, 0, 1, 1], [], []>} : vector<256x4xf32>, vector<4x16xf32>, vector<256x16xf32> -> vector<256x16xf32>
    %32 = arith.addf %28, %31 : vector<256x16xf32>
    %c3 = arith.constant 3 : index
    %c0_14 = arith.constant 0 : index
    %c0_15 = arith.constant 0 : index
    %33 = vector.load %arg3[%c3, %c0_14, %c0_15] : memref<9x4x16xf32, #tpu.memory_space<vmem>>, vector<1x4x16xf32>
    %34 = vector.shape_cast %33 : vector<1x4x16xf32> to vector<4x16xf32>
    %cst_16 = arith.constant dense<0.000000e+00> : vector<256x16xf32>
    %35 = tpu.matmul %9, %34, %cst_16 {dimension_numbers = #tpu.dot_dimension_numbers<[1], [0], [0], [1], [0, 0, 1, 1], [], []>} : vector<256x4xf32>, vector<4x16xf32>, vector<256x16xf32> -> vector<256x16xf32>
    %36 = arith.addf %32, %35 : vector<256x16xf32>
    %c4 = arith.constant 4 : index
    %c0_17 = arith.constant 0 : index
    %c0_18 = arith.constant 0 : index
    %37 = vector.load %arg3[%c4, %c0_17, %c0_18] : memref<9x4x16xf32, #tpu.memory_space<vmem>>, vector<1x4x16xf32>
    %38 = vector.shape_cast %37 : vector<1x4x16xf32> to vector<4x16xf32>
    %cst_19 = arith.constant dense<0.000000e+00> : vector<256x16xf32>
    %39 = tpu.matmul %11, %38, %cst_19 {dimension_numbers = #tpu.dot_dimension_numbers<[1], [0], [0], [1], [0, 0, 1, 1], [], []>} : vector<256x4xf32>, vector<4x16xf32>, vector<256x16xf32> -> vector<256x16xf32>
    %40 = arith.addf %36, %39 : vector<256x16xf32>
    %c5 = arith.constant 5 : index
    %c0_20 = arith.constant 0 : index
    %c0_21 = arith.constant 0 : index
    %41 = vector.load %arg3[%c5, %c0_20, %c0_21] : memref<9x4x16xf32, #tpu.memory_space<vmem>>, vector<1x4x16xf32>
    %42 = vector.shape_cast %41 : vector<1x4x16xf32> to vector<4x16xf32>
    %cst_22 = arith.constant dense<0.000000e+00> : vector<256x16xf32>
    %43 = tpu.matmul %13, %42, %cst_22 {dimension_numbers = #tpu.dot_dimension_numbers<[1], [0], [0], [1], [0, 0, 1, 1], [], []>} : vector<256x4xf32>, vector<4x16xf32>, vector<256x16xf32> -> vector<256x16xf32>
    %44 = arith.addf %40, %43 : vector<256x16xf32>
    %c6 = arith.constant 6 : index
    %c0_23 = arith.constant 0 : index
    %c0_24 = arith.constant 0 : index
    %45 = vector.load %arg3[%c6, %c0_23, %c0_24] : memref<9x4x16xf32, #tpu.memory_space<vmem>>, vector<1x4x16xf32>
    %46 = vector.shape_cast %45 : vector<1x4x16xf32> to vector<4x16xf32>
    %cst_25 = arith.constant dense<0.000000e+00> : vector<256x16xf32>
    %47 = tpu.matmul %15, %46, %cst_25 {dimension_numbers = #tpu.dot_dimension_numbers<[1], [0], [0], [1], [0, 0, 1, 1], [], []>} : vector<256x4xf32>, vector<4x16xf32>, vector<256x16xf32> -> vector<256x16xf32>
    %48 = arith.addf %44, %47 : vector<256x16xf32>
    %c7 = arith.constant 7 : index
    %c0_26 = arith.constant 0 : index
    %c0_27 = arith.constant 0 : index
    %49 = vector.load %arg3[%c7, %c0_26, %c0_27] : memref<9x4x16xf32, #tpu.memory_space<vmem>>, vector<1x4x16xf32>
    %50 = vector.shape_cast %49 : vector<1x4x16xf32> to vector<4x16xf32>
    %cst_28 = arith.constant dense<0.000000e+00> : vector<256x16xf32>
    %51 = tpu.matmul %17, %50, %cst_28 {dimension_numbers = #tpu.dot_dimension_numbers<[1], [0], [0], [1], [0, 0, 1, 1], [], []>} : vector<256x4xf32>, vector<4x16xf32>, vector<256x16xf32> -> vector<256x16xf32>
    %52 = arith.addf %48, %51 : vector<256x16xf32>
    %c8 = arith.constant 8 : index
    %c0_29 = arith.constant 0 : index
    %c0_30 = arith.constant 0 : index
    %53 = vector.load %arg3[%c8, %c0_29, %c0_30] : memref<9x4x16xf32, #tpu.memory_space<vmem>>, vector<1x4x16xf32>
    %54 = vector.shape_cast %53 : vector<1x4x16xf32> to vector<4x16xf32>
    %cst_31 = arith.constant dense<0.000000e+00> : vector<256x16xf32>
    %55 = tpu.matmul %19, %54, %cst_31 {dimension_numbers = #tpu.dot_dimension_numbers<[1], [0], [0], [1], [0, 0, 1, 1], [], []>} : vector<256x4xf32>, vector<4x16xf32>, vector<256x16xf32> -> vector<256x16xf32>
    %56 = arith.addf %52, %55 : vector<256x16xf32>
    %c0_32 = arith.constant 0 : index
    %c0_33 = arith.constant 0 : index
    %57 = vector.load %arg4[%c0_32, %c0_33] : memref<1x16xf32, #tpu.memory_space<vmem>>, vector<1x16xf32>
    %58 = vector.broadcast %57 : vector<1x16xf32> to vector<256x16xf32>
    %59 = arith.addf %56, %58 : vector<256x16xf32>
    %c0_34 = arith.constant 0 : index
    %c0_35 = arith.constant 0 : index
    %c0_36 = arith.constant 0 : index
    %c0_37 = arith.constant 0 : index
    %60 = vector.load %arg5[%c0_34, %c0_35, %c0_36, %c0_37] : memref<1x1x256x16xf32, #tpu.memory_space<vmem>>, vector<1x1x256x16xf32>
    %61 = vector.shape_cast %60 : vector<1x1x256x16xf32> to vector<256x16xf32>
    %62 = vector.shape_cast %59 : vector<256x16xf32> to vector<1x1x256x16xf32>
    tpu.vector_store %arg5[%c0_34, %c0_35, %c0_36, %c0_37], %62 {strides = array<i32>} : memref<1x1x256x16xf32, #tpu.memory_space<vmem>>, vector<1x1x256x16xf32>,
    return
  }
  func.func @transform_0(%arg0: i32, %arg1: i32) -> (i32, i32, i32, i32, i32) {
    %c0_i32 = arith.constant 0 : i32
    %c0_i32_0 = arith.constant 0 : i32
    %c0_i32_1 = arith.constant 0 : i32
    %c0_i32_2 = arith.constant 0 : i32
    return %arg0, %arg1, %c0_i32, %c0_i32_0, %c0_i32_1 : i32, i32, i32, i32, i32
  }
  func.func @transform_1(%arg0: i32, %arg1: i32) -> (i32, i32, i32) {
    %c0_i32 = arith.constant 0 : i32
    %c0_i32_0 = arith.constant 0 : i32
    %c0_i32_1 = arith.constant 0 : i32
    %c0_i32_2 = arith.constant 0 : i32
    return %c0_i32, %c0_i32_0, %c0_i32_1 : i32, i32, i32
  }
  func.func @transform_2(%arg0: i32, %arg1: i32) -> (i32, i32) {
    %c0_i32 = arith.constant 0 : i32
    %c0_i32_0 = arith.constant 0 : i32
    %c0_i32_1 = arith.constant 0 : i32
    return %c0_i32, %c0_i32_0 : i32, i32
  }
  func.func @transform_3(%arg0: i32, %arg1: i32) -> (i32, i32, i32, i32) {
    %c0_i32 = arith.constant 0 : i32
    %c0_i32_0 = arith.constant 0 : i32
    %c0_i32_1 = arith.constant 0 : i32
    return %arg0, %arg1, %c0_i32, %c0_i32_0 : i32, i32, i32, i32
  }
}

</mosaic_0001>

<bundles_post_ra>
// kernel: tile.9
= control target key start
LH: loop header
LB: loop body
LE: loop exit
PB: predicated region body
PF: predicated region fallthrough
CT: control target
= control target key end

     0   :  { %vm7_vm0 = vcmask 31744   ;;  %s37_s8 = smov 4   ;;  %s38_s9 = smov 8   ;;  %vm13_vm1 = vcmask 130144   ;;  %vm19_vm2 = vcmask 97344   ;;  %vm25_vm3 = vcmask 64544   ;;  %s55_s0 = inlined_call_operand.vmem [shape: f32[4,4], index: 0, kind: input, shape index: {}]   ;;  %s56_s1 = inlined_call_operand.vmem [shape: f32[1,16], index: 1, kind: output, shape index: {}]  }
   0x1   :  { %v4_v0 = vld [vmem:[%s55_s0] sm:$0xf]  ;;  %s36_s0 = smov 12  }
   0x2   :  { %5 = vst [vmem:[#allocation1] sm:$0xf] %v4_v0 }
   0x9   :  { %v10_v1 = vld [vmem:[#allocation1 + $0x3] sm:$0x1]   ;;  %v22_v2 = vld [vmem:[#allocation1 + $0x1] sm:$0x1]   ;;  %v6_v3 = vld [vmem:[#allocation1] sm:$0x1]  }
   0xa   :  { %11 = vrot.lane.b32.xlu0 %v10_v1, %s36_s0  ;;  %23 = vrot.lane.b32.xlu1 %v22_v2, %s37_s8  ;;  %v16_v4 = vld [vmem:[#allocation1 + $0x2] sm:$0x1]   ;;  %8 = vst.msk [vmem:[#allocation0] sm:$0x1] %vm7_vm0, %v6_v3  }
   0xe   :  { %17 = vrot.lane.b32.xlu0 %v16_v4, %s38_s9 }
  0x7c   :  { %v12_v5 = vpop.permute.xlu0 %11   ;;  %v24_v6 = vpop.permute.xlu1 %23  }
  0x7d   :  { %14 = vst.msk [vmem:[#allocation0] sm:$0x1] %vm13_vm1, %v12_v5  }
  0x80   :  { %v18_v7 = vpop.permute.xlu0 %17  }
  0x81   :  { %20 = vst.msk [vmem:[#allocation0] sm:$0x1] %vm19_vm2, %v18_v7  }
  0x82   :  { %26 = vst.msk [vmem:[#allocation0] sm:$0x1] %vm25_vm3, %v24_v6  }
  0x89   :  { %v30_v8 = vld [vmem:[#allocation0] sm:$0x1] }
  0x8a   :  { %32 = vst [vmem:[%s56_s1] sm:$0x1] %v30_v8 }

// kernel: tile.8
= control target key start
LH: loop header
LB: loop body
LE: loop exit
PB: predicated region body
PF: predicated region fallthrough
CT: control target
= control target key end

     0   :  { %s22_s0 = inlined_call_operand.vmem [shape: f32[4], index: 0, kind: input, shape index: {}]   ;;  %s23_s1 = inlined_call_operand.vmem [shape: f32[4,4], index: 1, kind: output, shape index: {}]  }
   0x1   :  { %v4_v0 = vld [vmem:[%s22_s0] ss:$0 sm:$0xff] }
   0x2   :  { %5 = vst [vmem:[%s23_s1] sm:$0xf] %v4_v0 }

// kernel: upsample_conv_transpose.1
= control target key start
LH: loop header
LB: loop body
LE: loop exit
PB: predicated region body
PF: predicated region fallthrough
CT: control target
= control target key end

     0   :  { %s4563_s12 = smov 0   ;;  %s4565_s13 = smov 0   ;;  %s5811_s0 = inlined_call_operand.vmem [shape: f32[2,1,18,18,4], index: 0, kind: input, shape index: {}]   ;;  %s5812_s1 = inlined_call_operand.vmem [shape: f32[9,4,16], index: 1, kind: input, shape index: {}]   ;;  %s5813_s2 = inlined_call_operand.vmem [shape: f32[1,16], index: 2, kind: input, shape index: {}]   ;;  %s5814_s3 = inlined_call_operand.vmem [shape: f32[2,1,256,16], index: 3, kind: output, shape index: {}]  }
   0x1   :  { %s4567_s14 = smov 0  }
   0x2 LB: > { %s25_s15 = sadd.s32 1, %s4537_s13  ;;  %p3176_p0 = scmp.ge.s32.totalorder %s4541_s14, 1  ;;  %s4541_s14 = sphi %s4567_s14, %s13_s14   ;;  %s4537_s13 = sphi %s4565_s13, %s5990_s13   ;;  %s4533_s12 = sphi %s4563_s12, %s5989_s12  }
   0x3   : > { %p27_p1 = scmp.ge.s32.totalorder %s25_s15, 2  ;;  %p157_p2 = scmp.lt.s32.totalorder %s4541_s14, 3 }
   0x5   : > { %s5992_s15 = smov (%p27_p1, %s25_s15), 0  ;;  %p158_p3 = pnand %p3176_p0, %p157_p2 }
   0x7   : > { %161 = sbr.rel (%p158_p3) target bundleno = 528 (0x210), region = 32 }
   0xe   : > { %v3180_v0 = vld [vmem:[%s5812_s1 + $0x4] sm:$0xf]  ;;  %vm565_vm0 = vcmask 1043456   ;;  %v4587_v1 = vld [vmem:[%s5812_s1 + $0x10] sm:$0xf]  ;;  %p189_p4 = scmp.lt.s32.totalorder %s4533_s12, 1 }
   0xf   : > { %3786 = vmatprep.subr.msk.mxu1 %vm565_vm0, %v3180_v0  ;;  %3986 = vmatprep.subr.msk.mxu0 %vm565_vm0, %v4587_v1  ;;  %v497_v2 = vld [vmem:[%s5812_s1] sm:$0xf]  ;;  %v3349_v3 = vld [vmem:[%s5812_s1 + $0x14] sm:$0xf]  ;;  %vm309_vm1 = vcmask 1046528   ;;  %vm500_vm2 = vcmask 31744  }
  0x10   : > { %3787 = vmatpush3.msk.msra.mxu1 %vm565_vm0, %v3180_v0  ;;  %3987 = vmatpush3.msk.msra.mxu0 %vm565_vm0, %v4587_v1  ;;  %s5994_s12 = smov (!%p189_p4, %s4533_s12), 1  ;;  %v4674_v33 = vld [vmem:[%s5812_s1 + $0x18] sm:$0xf]  ;;  %v4684_v35 = vld [vmem:[%s5812_s1 + $0x8] sm:$0xf]  ;;  %vm390_vm3 = vcmask 1045504  }
  0x11   : > { %3836 = vmatprep.subr.msk.mxu1 %vm565_vm0, %v497_v2  ;;  %4036 = vmatprep.subr.msk.mxu0 %vm565_vm0, %v3349_v3  ;;  %s4494_s24 = smul.u32 432, %s5994_s12  ;;  %s3488_s11 = sshll.u32 %s5994_s12, 8  ;;  %vm3047_vm4 = vcmask 130048  }
  0x12   : > { %s5703_s20 = scalar_lea.vmem %s5814_s3, %s3488_s11 }
  0x13   : > { %s4609_s27 = scalar_lea.vmem %s5811_s0, %s4494_s24 }
  0x14   : > { %v4612_v4 = vld [vmem:[%s4609_s27] sm:$0xff]  ;;  %v4615_v5 = vld [vmem:[%s4609_s27 + $0x8] sm:$0xff]  ;;  %v4618_v6 = vld [vmem:[%s4609_s27 + $0x18] sm:$0xff] }
  0x15   : > { %5888 = vst [vmem:[#allocation2_spill] sm:$0xff] %v4618_v6  ;;  %v310_v7 = vrot.slane %v4612_v4, 1  ;;  %v311_v8 = vrot.slane %v4615_v5, 1  ;;  %v4623_v9 = vld [vmem:[%s4609_s27 + $0x20] sm:$0xff]  ;;  %v315_v10 = vrot.slane %v4618_v6, 1  ;;  %v4635_v15 = vld [vmem:[%s4609_s27 + $0x30] sm:$0xff] }
  0x16   : > { %5889 = vst [vmem:[#allocation3_spill] sm:$0xff] %v4623_v9  ;;  %v4627_v11 = vld [vmem:[%s4609_s27 + $0x10] sm:$0x3]  ;;  %v316_v12 = vrot.slane %v4623_v9, 1  ;;  %v4632_v14 = vld [vmem:[%s4609_s27 + $0x28] sm:$0x3] }
  0x17   : > { %v313_v13 = vrot.slane %v4627_v11, 1  ;;  %v312_v16 = vsel %vm309_vm1, %v310_v7, %v311_v8  ;;  %v318_v17 = vrot.slane %v4632_v14, 1  ;;  %v4640_v18 = vld [vmem:[%s4609_s27 + $0x38] sm:$0xff]  ;;  %v320_v19 = vrot.slane %v4635_v15, 1  ;;  %v4644_v20 = vld [vmem:[%s4609_s27 + $0x40] sm:$0x3] }
  0x18   : > { %3788 = vmatprep.mubr.msk.f32.mxu1 %vm500_vm2, %v312_v16  ;;  %v317_v21 = vsel %vm309_vm1, %v315_v10, %v316_v12  ;;  %v321_v23 = vrot.slane %v4640_v18, 1  ;;  %v323_v24 = vrot.slane %v4644_v20, 1  ;;  %v4652_v25 = vld [vmem:[%s4609_s27 + $0x48] sm:$0xff]  ;;  %v4655_v26 = vld [vmem:[%s4609_s27 + $0x50] sm:$0xff]  ;;  %v4658_v27 = vld [vmem:[%s4609_s27 + $0x58] sm:$0x3] }
  0x19   : > { %v314_v22 = vsel %vm309_vm1, %v311_v8, %v313_v13  ;;  %3988 = vmatprep.mubr.msk.f32.mxu0 %vm500_vm2, %v317_v21  ;;  %v319_v28 = vsel %vm309_vm1, %v316_v12, %v318_v17  ;;  %v325_v29 = vrot.slane %v4652_v25, 1  ;;  %v326_v30 = vrot.slane %v4655_v26, 1  ;;  %v4666_v31 = vld [vmem:[%s4609_s27 + $0x60] sm:$0xff]  ;;  %v4669_v32 = vld [vmem:[%s4609_s27 + $0x68] sm:$0xff]  ;;  %v4700_v41 = vld [vmem:[%s4609_s27 + $0x70] sm:$0x3] }
  0x1a   : > { %3789 = vmatmul.mubr.msk.f32.vlgmr.msra.gmra.mrb[0].mxu1 %vm500_vm2, %v314_v22  ;;  %3989 = vmatmul.mubr.msk.f32.vlgmr.msra.gmra.mrb[0].mxu0 %vm500_vm2, %v319_v28  ;;  %v4679_v34 = vsel %vm309_vm1, %v320_v19, %v321_v23  ;;  %v4689_v36 = vsel %vm309_vm1, %v321_v23, %v323_v24  ;;  %v328_v37 = vrot.slane %v4658_v27, 1  ;;  %v330_v39 = vrot.slane %v4666_v31, 1  ;;  %v4706_v42 = vld [vmem:[%s4609_s27 + $0x78] sm:$0xff]  ;;  %v4709_v43 = vld [vmem:[%s4609_s27 + $0x80] sm:$0xff]  ;;  %v4729_v49 = vld [vmem:[%s4609_s27 + $0x88] sm:$0x3] }
  0x1b   : > { %3837 = vmatpush3.msk.msra.mxu1 %vm565_vm0, %v497_v2  ;;  %5890 = vst [vmem:[#allocation4_spill] sm:$0xff] %v4679_v34  ;;  %4037 = vmatpush3.msk.msra.mxu0 %vm565_vm0, %v3349_v3  ;;  %5891 = vst [vmem:[#allocation5_spill] sm:$0xff] %v4689_v36  ;;  %v4695_v38 = vsel %vm309_vm1, %v325_v29, %v326_v30  ;;  %v331_v40 = vrot.slane %v4669_v32, 1  ;;  %v333_v45 = vrot.slane %v4700_v41, 1  ;;  %v335_v47 = vrot.slane %v4706_v42, 1  ;;  %v4734_v50 = vld [vmem:[%s4609_s27 + $0x90] sm:$0xff] }
  0x1c   : > { %3791 = vmatprep.mubr.msk.f32.mxu1 %vm500_vm2, %v317_v21  ;;  %3991 = vmatprep.mubr.msk.f32.mxu0 %vm500_vm2, %v4679_v34  ;;  %5892 = vst [vmem:[#allocation6_spill] sm:$0xff] %v4695_v38  ;;  %v4720_v44 = vsel %vm309_vm1, %v326_v30, %v328_v37  ;;  %v336_v48 = vrot.slane %v4709_v43, 1  ;;  %v4737_v51 = vld [vmem:[%s4609_s27 + $0x98] sm:$0xff]  ;;  %v338_v53 = vrot.slane %v4729_v49, 1  ;;  %v340_v55 = vrot.slane %v4734_v50, 1  ;;  %v4760_v58 = vld [vmem:[%s4609_s27 + $0xa8] sm:$0xff] }
  0x1d   : > { %4086 = vmatprep.subr.msk.mxu0 %vm565_vm0, %v4674_v33  ;;  %3886 = vmatprep.subr.msk.mxu1 %vm565_vm0, %v4684_v35  ;;  %5893 = vst [vmem:[#allocation7_spill] sm:$0xff] %v4720_v44  ;;  %v4724_v46 = vsel %vm309_vm1, %v330_v39, %v331_v40  ;;  %v4746_v52 = vsel %vm309_vm1, %v331_v40, %v333_v45  ;;  %v341_v56 = vrot.slane %v4737_v51, 1  ;;  %v4755_v57 = vld [vmem:[%s4609_s27 + $0xa0] sm:$0x3]  ;;  %v4763_v59 = vld [vmem:[%s4609_s27 + $0xb0] sm:$0xff]  ;;  %v345_v63 = vrot.slane %v4760_v58, 1 }
  0x1e   : > { %3792 = vmatmul.mubr.msk.f32.gmra.mrb[2].mxu1 %vm500_vm2, %v319_v28  ;;  %3992 = vmatmul.mubr.msk.f32.gmra.mrb[2].mxu0 %vm500_vm2, %v4689_v36  ;;  %5894 = vst [vmem:[#allocation8_spill] sm:$0xff] %v4724_v46  ;;  %5895 = vst [vmem:[#allocation9_spill] sm:$0xff] %v4746_v52  ;;  %v4750_v54 = vsel %vm309_vm1, %v335_v47, %v336_v48  ;;  %v4772_v60 = vsel %vm309_vm1, %v336_v48, %v338_v53  ;;  %v343_v61 = vrot.slane %v4755_v57, 1  ;;  %v4781_v2 = vld [vmem:[%s4609_s27 + $0xb8] sm:$0x3]  ;;  %v4786_v3 = vld [vmem:[%s4609_s27 + $0xc0] sm:$0xff] }
  0x1f   : > { %3794 = vmatprep.mubr.msk.f32.mxu1 %vm500_vm2, %v4679_v34  ;;  %3994 = vmatprep.mubr.msk.f32.mxu0 %vm500_vm2, %v4695_v38  ;;  %5896 = vst [vmem:[#allocation10_spill] sm:$0xff] %v4750_v54  ;;  %5897 = vst [vmem:[#allocation11_spill] sm:$0xff] %v4772_v60  ;;  %v4776_v62 = vsel %vm309_vm1, %v340_v55, %v341_v56  ;;  %v346_v0 = vrot.slane %v4763_v59, 1  ;;  %v4789_v7 = vld [vmem:[%s4609_s27 + $0xc8] sm:$0xff]  ;;  %v348_v10 = vrot.slane %v4781_v2, 1  ;;  %v350_v13 = vrot.slane %v4786_v3, 1 }
  0x20   : > { %5898 = vst [vmem:[#allocation12_spill] sm:$0xff] %v4776_v62  ;;  %v4798_v8 = vsel %vm309_vm1, %v341_v56, %v343_v61  ;;  %v351_v16 = vrot.slane %v4789_v7, 1  ;;  %v4807_v17 = vld [vmem:[%s4609_s27 + $0xd0] sm:$0x3]  ;;  %v396_v23 = vrot.slane %v4618_v6, 2  ;;  %v397_v24 = vrot.slane %v4623_v9, 2 }
  0x21   : > { %5899 = vst [vmem:[#allocation13_spill] sm:$0xff] %v4798_v8  ;;  %v4802_v12 = vsel %vm309_vm1, %v345_v63, %v346_v0  ;;  %v4818_v19 = vsel %vm309_vm1, %v346_v0, %v348_v10  ;;  %v353_v21 = vrot.slane %v4807_v17, 1  ;;  %v4827_v28 = vld [vmem:[%s4609_s27 + $0xd8] sm:$0xff]  ;;  %v4830_v29 = vld [vmem:[%s4609_s27 + $0xe0] sm:$0xff]  ;;  %v399_v30 = vrot.slane %v4632_v14, 2  ;;  %v4855_v53 = vld [vmem:[%s4609_s27 + $0xf0] sm:$0xff] }
  0x22   : > { %3795 = vmatmul.mubr.msk.f32.gmra.mrb[4].mxu1 %vm500_vm2, %v4689_v36  ;;  %3995 = vmatmul.mubr.msk.f32.gmra.mrb[4].mxu0 %vm500_vm2, %v4720_v44  ;;  %5900 = vst [vmem:[#allocation14_spill] sm:$0xff] %v4802_v12  ;;  %5901 = vst [vmem:[#allocation15_spill] sm:$0xff] %v4818_v19  ;;  %v4822_v22 = vsel %vm309_vm1, %v350_v13, %v351_v16  ;;  %v355_v39 = vrot.slane %v4827_v28, 1  ;;  %v356_v40 = vrot.slane %v4830_v29, 1  ;;  %v4847_v45 = vld [vmem:[%s4609_s27 + $0xe8] sm:$0x3] }
  0x23   : > { %3797 = vmatprep.mubr.msk.f32.mxu1 %vm500_vm2, %v4695_v38  ;;  %3997 = vmatprep.mubr.msk.f32.mxu0 %vm500_vm2, %v4724_v46  ;;  %5902 = vst [vmem:[#allocation16_spill] sm:$0xff] %v4822_v22  ;;  %v4842_v37 = vsel %vm309_vm1, %v351_v16, %v353_v21  ;;  %v4850_v47 = vsel %vm390_vm3, %v396_v23, %v397_v24  ;;  %v401_v48 = vrot.slane %v4635_v15, 2  ;;  %v402_v14 = vrot.slane %v4640_v18, 2  ;;  %v4858_v55 = vld [vmem:[%s4609_s27 + $0xf8] sm:$0xff]  ;;  %v4879_v16 = vld [vmem:[%s4609_s27 + $0x100] sm:$0x3] }
  0x24   : > { %5903 = vst [vmem:[#allocation17_spill] sm:$0xff] %v4842_v37  ;;  %v358_v56 = vrot.slane %v4847_v45, 1  ;;  %v404_v61 = vrot.slane %v4644_v20, 2  ;;  %v4871_v63 = vsel %vm390_vm3, %v397_v24, %v399_v30  ;;  %v4874_v0 = vsel %vm309_vm1, %v355_v39, %v356_v40  ;;  %v4890_v24 = vld [vmem:[%s4609_s27 + $0x110] sm:$0xff]  ;;  %v4897_v30 = vld [vmem:[%s5812_s1 + $0x1c] sm:$0xf] }
  0x25   : > { %5904 = vst [vmem:[#allocation18_spill] sm:$0xff] %v4874_v0  ;;  %v360_v10 = vrot.slane %v4855_v53, 1  ;;  %v361_v13 = vrot.slane %v4858_v55, 1  ;;  %v4882_v21 = vsel %vm390_vm3, %v401_v48, %v402_v14  ;;  %v406_v20 = vrot.slane %v4652_v25, 2  ;;  %v4993_v36 = vld [vmem:[%s4609_s27 + $0x148] sm:$0x3] }
  0x26   : > { %3798 = vmatmul.mubr.msk.f32.gmra.mrb[6].mxu1 %vm500_vm2, %v4720_v44  ;;  %3998 = vmatmul.mubr.msk.f32.gmra.mrb[6].mxu0 %vm500_vm2, %v4746_v52  ;;  %v407_v23 = vrot.slane %v4655_v26, 2  ;;  %v4904_v39 = vsel %vm309_vm1, %v356_v40, %v358_v56  ;;  %v4907_v48 = vsel %vm390_vm3, %v402_v14, %v404_v61  ;;  %v366_v40 = vrot.slane %v4890_v24, 1  ;;  %v4921_v56 = vld [vmem:[%s4609_s27 + $0x118] sm:$0x3] }
  0x27   : > { %3800 = vmatprep.mubr.msk.f32.mxu1 %vm500_vm2, %v4724_v46  ;;  %4000 = vmatprep.mubr.msk.f32.mxu0 %vm500_vm2, %v4750_v54  ;;  %5905 = vst [vmem:[#allocation19_spill] sm:$0xff] %v4904_v39  ;;  %5906 = vst [vmem:[#allocation20_spill] sm:$0xff] %v4907_v48  ;;  %v411_v61 = vrot.slane %v4666_v31, 2  ;;  %v4966_v46 = vld [vmem:[%s4609_s27 + $0x138] sm:$0xff]  ;;  %v419_v44 = vrot.slane %v4729_v49, 2  ;;  %v424_v34 = vrot.slane %v4755_v57, 2 }
  0x28   : > { %v4924_v14 = vsel %vm390_vm3, %v406_v20, %v407_v23  ;;  %v368_v20 = vrot.slane %v4921_v56, 1  ;;  %v375_v38 = vrot.slane %v4966_v46, 1  ;;  %v426_v57 = vrot.slane %v4760_v58, 2 }
  0x29   : > { %5908 = vst [vmem:[#allocation22_spill] sm:$0xff] %v4924_v14 }
  0x2a   : > { %3801 = vmatmul.mubr.msk.f32.gmra.mrb[8].mxu1 %vm500_vm2, %v4746_v52  ;;  %4001 = vmatmul.mubr.msk.f32.gmra.mrb[8].mxu0 %vm500_vm2, %v4772_v60  ;;  %v4958_v52 = vld [vmem:[%s4609_s27 + $0x130] sm:$0x3] }
  0x2b   : > { %3803 = vmatprep.mubr.msk.f32.mxu1 %vm500_vm2, %v4750_v54  ;;  %4003 = vmatprep.mubr.msk.f32.mxu0 %vm500_vm2, %v4776_v62 }
  0x2e   : > { %3804 = vmatmul.mubr.msk.f32.gmra.mrb[10].mxu1 %vm500_vm2, %v4772_v60  ;;  %4004 = vmatmul.mubr.msk.f32.gmra.mrb[10].mxu0 %vm500_vm2, %v4798_v8 }
  0x2f   : > { %3806 = vmatprep.mubr.msk.f32.mxu1 %vm500_vm2, %v4776_v62  ;;  %4006 = vmatprep.mubr.msk.f32.mxu0 %vm500_vm2, %v4802_v12  ;;  %v414_v62 = vrot.slane %v4700_v41, 2  ;;  %v416_v41 = vrot.slane %v4706_v42, 2 }
  0x32   : > { %3807 = vmatmul.mubr.msk.f32.gmra.mrb[12].mxu1 %vm500_vm2, %v4798_v8  ;;  %4007 = vmatmul.mubr.msk.f32.gmra.mrb[12].mxu0 %vm500_vm2, %v4818_v19  ;;  %v4929_v8 = vld [vmem:[%s4609_s27 + $0x120] sm:$0xff] }
  0x33   : > { %3809 = vmatprep.mubr.msk.f32.mxu1 %vm500_vm2, %v4802_v12  ;;  %4009 = vmatprep.mubr.msk.f32.mxu0 %vm500_vm2, %v4822_v22  ;;  %v409_v12 = vrot.slane %v4658_v27, 2  ;;  %v370_v54 = vrot.slane %v4929_v8, 1 }
  0x35   : > { %v4950_v60 = vsel %vm390_vm3, %v407_v23, %v409_v12  ;;  %v4969_v12 = vld [vmem:[%s4609_s27 + $0x140] sm:$0xff] }
  0x36   : > { %3810 = vmatmul.mubr.msk.f32.gmra.mrb[14].mxu1 %vm500_vm2, %v4818_v19  ;;  %4010 = vmatmul.mubr.msk.f32.gmra.mrb[14].mxu0 %vm500_vm2, %v4842_v37  ;;  %v4915_v19 = vsel %vm309_vm1, %v360_v10, %v361_v13  ;;  %v4932_v10 = vld [vmem:[%s4609_s27 + $0x128] sm:$0xff]  ;;  %5910 = vst [vmem:[#allocation24_spill] sm:$0xff] %v4950_v60 }
  0x37   : > { %3812 = vmatprep.mubr.msk.f32.mxu1 %vm500_vm2, %v4822_v22  ;;  %4038 = vmatprep.mubr.msk.f32.mxu0 %vm500_vm2, %v4850_v47  ;;  %v4887_v22 = vld [vmem:[%s4609_s27 + $0x108] sm:$0xff]  ;;  %5907 = vst [vmem:[#allocation21_spill] sm:$0xff] %v4915_v19 }
  0x3a   : > { %3813 = vmatmul.mubr.msk.f32.gmra.mrb[16].mxu1 %vm500_vm2, %v4842_v37  ;;  %4039 = vmatmul.mubr.msk.f32.vlgmr.msra.gmra.mrb[0].mxu0 %vm500_vm2, %v4871_v63  ;;  %v363_v37 = vrot.slane %v4879_v16, 1 }
  0x3b   : > { %3815 = vmatprep.mubr.msk.f32.mxu1 %vm500_vm2, %v4874_v0  ;;  %4087 = vmatpush3.msk.msra.mxu0 %vm565_vm0, %v4674_v33  ;;  %v365_v0 = vrot.slane %v4887_v22, 1  ;;  %v412_v33 = vrot.slane %v4669_v32, 2 }
  0x3c   : > { %4041 = vmatprep.mubr.msk.f32.mxu0 %vm500_vm2, %v4882_v21  ;;  %4136 = vmatprep.subr.msk.mxu0 %vm565_vm0, %v4897_v30  ;;  %v4943_v27 = vsel %vm309_vm1, %v361_v13, %v363_v37  ;;  %v417_v13 = vrot.slane %v4709_v43, 2 }
  0x3d   : > { %5909 = vst [vmem:[#allocation23_spill] sm:$0xff] %v4943_v27  ;;  %v4961_v37 = vsel %vm390_vm3, %v411_v61, %v412_v33  ;;  %v4981_v23 = vsel %vm390_vm3, %v412_v33, %v414_v62  ;;  %v373_v61 = vrot.slane %v4958_v52, 1  ;;  %v421_v62 = vrot.slane %v4734_v50, 2 }
  0x3e   : > { %3816 = vmatmul.mubr.msk.f32.gmra.mrb[18].mxu1 %vm500_vm2, %v4904_v39  ;;  %4042 = vmatmul.mubr.msk.f32.gmra.mrb[2].mxu0 %vm500_vm2, %v4907_v48  ;;  %v4953_v39 = vsel %vm309_vm1, %v365_v0, %v366_v40  ;;  %5912 = vst [vmem:[#allocation26_spill] sm:$0xff] %v4961_v37  ;;  %v4978_v0 = vsel %vm309_vm1, %v366_v40, %v368_v20  ;;  %5914 = vst [vmem:[#allocation28_spill] sm:$0xff] %v4981_v23  ;;  %v422_v33 = vrot.slane %v4737_v51, 2  ;;  %v5001_v20 = vld [vmem:[%s4609_s27 + $0x150] sm:$0xff]  ;;  %v5063_v48 = vld [vmem:[%s4609_s27 + $0x178] sm:$0x3] }
  0x3f   : > { %3818 = vmatprep.mubr.msk.f32.mxu1 %vm500_vm2, %v4915_v19  ;;  %4044 = vmatprep.mubr.msk.f32.mxu0 %vm500_vm2, %v4924_v14  ;;  %5911 = vst [vmem:[#allocation25_spill] sm:$0xff] %v4953_v39  ;;  %v371_v19 = vrot.slane %v4932_v10, 1  ;;  %5913 = vst [vmem:[#allocation27_spill] sm:$0xff] %v4978_v0  ;;  %v4996_v40 = vsel %vm390_vm3, %v416_v41, %v417_v13  ;;  %v378_v41 = vrot.slane %v4993_v36, 1 }
  0x40   : > { %5916 = vst [vmem:[#allocation30_spill] sm:$0xff] %v4996_v40 }
  0x41   : > { %v5013_v49 = vsel %vm309_vm1, %v371_v19, %v373_v61  ;;  %v427_v61 = vrot.slane %v4763_v59, 2 }
  0x42   : > { %3819 = vmatmul.mubr.msk.f32.gmra.mrb[20].mxu1 %vm500_vm2, %v4943_v27  ;;  %4045 = vmatmul.mubr.msk.f32.gmra.mrb[4].mxu0 %vm500_vm2, %v4950_v60  ;;  %v4987_v27 = vsel %vm309_vm1, %v370_v54, %v371_v19  ;;  %v5004_v54 = vld [vmem:[%s4609_s27 + $0x158] sm:$0xff]  ;;  %5917 = vst [vmem:[#allocation31_spill] sm:$0xff] %v5013_v49  ;;  %v5028_v60 = vld [vmem:[%s4609_s27 + $0x160] sm:$0x3]  ;;  %v5031_v19 = vsel %vm390_vm3, %v421_v62, %v422_v33 }
  0x43   : > { %3821 = vmatprep.mubr.msk.f32.mxu1 %vm500_vm2, %v4953_v39  ;;  %4047 = vmatprep.mubr.msk.f32.mxu0 %vm500_vm2, %v4961_v37  ;;  %5915 = vst [vmem:[#allocation29_spill] sm:$0xff] %v4987_v27  ;;  %v376_v39 = vrot.slane %v4969_v12, 1  ;;  %v5020_v37 = vsel %vm390_vm3, %v417_v13, %v419_v44  ;;  %v5039_v44 = vld [vmem:[%s4609_s27 + $0x170] sm:$0xff]  ;;  %v5051_v13 = vsel %vm390_vm3, %v422_v33, %v424_v34  ;;  %v383_v62 = vrot.slane %v5028_v60, 1 }
  0x44   : > { %5918 = vst [vmem:[#allocation32_spill] sm:$0xff] %v5020_v37  ;;  %5920 = vst [vmem:[#allocation34_spill] sm:$0xff] %v5039_v44  ;;  %v431_v34 = vrot.slane %v4786_v3, 2  ;;  %v432_v33 = vrot.slane %v4789_v7, 2 }
  0x45   : > { %5922 = vst [vmem:[#allocation36_spill] sm:$0xff] %v5051_v13 }
  0x46   : > { %3822 = vmatmul.mubr.msk.f32.gmra.mrb[22].mxu1 %vm500_vm2, %v4978_v0  ;;  %4048 = vmatmul.mubr.msk.f32.gmra.mrb[6].mxu0 %vm500_vm2, %v4981_v23  ;;  %v5023_v0 = vsel %vm309_vm1, %v375_v38, %v376_v39  ;;  %v380_v23 = vrot.slane %v5001_v20, 1  ;;  %v5048_v38 = vsel %vm309_vm1, %v376_v39, %v378_v41  ;;  %v5066_v39 = vsel %vm390_vm3, %v426_v57, %v427_v61 }
  0x47   : > { %3824 = vmatprep.mubr.msk.f32.mxu1 %vm500_vm2, %v4987_v27  ;;  %4050 = vmatprep.mubr.msk.f32.mxu0 %vm500_vm2, %v4996_v40  ;;  %5919 = vst [vmem:[#allocation33_spill] sm:$0xff] %v5023_v0  ;;  %v381_v27 = vrot.slane %v5004_v54, 1  ;;  %v5036_v40 = vld [vmem:[%s4609_s27 + $0x168] sm:$0xff]  ;;  %5921 = vst [vmem:[#allocation35_spill] sm:$0xff] %v5048_v38 }
  0x49   : > { %v5057_v14 = vsel %vm309_vm1, %v380_v23, %v381_v27  ;;  %v388_v23 = vrot.slane %v5063_v48, 1 }
  0x4a   : > { %3825 = vmatmul.mubr.msk.f32.gmra.mrb[24].mxu1 %vm500_vm2, %v5013_v49  ;;  %4051 = vmatmul.mubr.msk.f32.gmra.mrb[8].mxu0 %vm500_vm2, %v5020_v37  ;;  %5923 = vst [vmem:[#allocation37_spill] sm:$0xff] %v5057_v14  ;;  %v429_v49 = vrot.slane %v4781_v2, 2  ;;  %v385_v37 = vrot.slane %v5036_v40, 1  ;;  %v5077_v2 = vsel %vm309_vm1, %v381_v27, %v383_v62  ;;  %v437_v27 = vrot.slane %v4830_v29, 2 }
  0x4b   : > { %3827 = vmatprep.mubr.msk.f32.mxu1 %vm500_vm2, %v5023_v0  ;;  %4053 = vmatprep.mubr.msk.f32.mxu0 %vm500_vm2, %v5031_v19  ;;  %v386_v0 = vrot.slane %v5039_v44, 1  ;;  %5924 = vst [vmem:[#allocation38_spill] sm:$0xff] %v5077_v2  ;;  %v441_v62 = vrot.slane %v4855_v53, 2 }
  0x4c   : > { %v5083_v41 = vsel %vm390_vm3, %v427_v61, %v429_v49  ;;  %v439_v49 = vrot.slane %v4847_v45, 2 }
  0x4d   : > { %v5086_v57 = vsel %vm309_vm1, %v385_v37, %v386_v0  ;;  %v5101_v37 = vsel %vm309_vm1, %v386_v0, %v388_v23  ;;  %v5136_v23 = vld [vmem:[%s5812_s1 + $0xc] sm:$0xf] }
  0x4e   : > { %3828 = vmatmul.mubr.msk.f32.gmra.mrb[26].mxu1 %vm500_vm2, %v5048_v38  ;;  %4054 = vmatmul.mubr.msk.f32.gmra.mrb[10].mxu0 %vm500_vm2, %v5051_v13  ;;  %5925 = vst [vmem:[#allocation39_spill] sm:$0xff] %v5086_v57  ;;  %v434_v38 = vrot.slane %v4807_v17, 2  ;;  %v5090_v13 = vsel %vm390_vm3, %v431_v34, %v432_v33  ;;  %5926 = vst [vmem:[#allocation40_spill] sm:$0xff] %v5101_v37  ;;  %v442_v34 = vrot.slane %v4858_v55, 2 }
  0x4f   : > { %3830 = vmatprep.mubr.msk.f32.mxu1 %vm500_vm2, %v5057_v14  ;;  %4056 = vmatprep.mubr.msk.f32.mxu0 %vm500_vm2, %v5066_v39  ;;  %v436_v14 = vrot.slane %v4827_v28, 2  ;;  %v5123_v45 = vsel %vm390_vm3, %v437_v27, %v439_v49 }
  0x50   : > { %v5106_v17 = vsel %vm390_vm3, %v432_v33, %v434_v38  ;;  %v5127_v0 = vsel %vm390_vm3, %v441_v62, %v442_v34  ;;  %v446_v38 = vrot.slane %v4887_v22, 2  ;;  %v447_v33 = vrot.slane %v4890_v24, 2 }
  0x51   : > { %v5110_v61 = vsel %vm390_vm3, %v436_v14, %v437_v27  ;;  %v444_v14 = vrot.slane %v4879_v16, 2  ;;  %v449_v27 = vrot.slane %v4921_v56, 2  ;;  %v451_v62 = vrot.slane %v4929_v8, 2 }
  0x52   : > { %3831 = vmatmul.mubr.msk.f32.gmra.mrb[28].mxu1 %vm500_vm2, %v5077_v2  ;;  %4057 = vmatmul.mubr.msk.f32.gmra.mrb[12].mxu0 %vm500_vm2, %v5083_v41  ;;  %v5151_v49 = vsel %vm390_vm3, %v446_v38, %v447_v33  ;;  %v456_v38 = vrot.slane %v4966_v46, 2  ;;  %v467_v2 = vrot.slane %v5039_v44, 2 }
  0x53   : > { %3833 = vmatprep.mubr.msk.f32.mxu1 %vm500_vm2, %v5086_v57  ;;  %4059 = vmatprep.mubr.msk.f32.mxu0 %vm500_vm2, %v5090_v13  ;;  %v5147_v16 = vsel %vm390_vm3, %v442_v34, %v444_v14  ;;  %5927 = vst [vmem:[#allocation41_spill] sm:$0xff] %v5151_v49  ;;  %v5166_v56 = vsel %vm390_vm3, %v447_v33, %v449_v27  ;;  %v454_v34 = vrot.slane %v4958_v52, 2  ;;  %v459_v33 = vrot.slane %v4993_v36, 2 }
  0x54   : > { %v462_v57 = vrot.slane %v5004_v54, 2 }
  0x56   : > { %3834 = vmatmul.mubr.msk.f32.gmra.mrb[30].mxu1 %vm500_vm2, %v5101_v37  ;;  %4060 = vmatmul.mubr.msk.f32.gmra.mrb[14].mxu0 %vm500_vm2, %v5106_v17  ;;  %v457_v37 = vrot.slane %v4969_v12, 2 }
  0x57   : > { %3838 = vmatprep.mubr.msk.f32.mxu1 %vm500_vm2, %v4612_v4  ;;  %4062 = vmatprep.mubr.msk.f32.mxu0 %vm500_vm2, %v5110_v61 }
  0x58   : > { %v5187_v27 = vsel %vm390_vm3, %v456_v38, %v457_v37  ;;  %v5200_v36 = vsel %vm390_vm3, %v457_v37, %v459_v33  ;;  %v466_v38 = vrot.slane %v5036_v40, 2  ;;  %v469_v37 = vrot.slane %v5063_v48, 2 }
  0x59   : > { %5929 = vst [vmem:[#allocation43_spill] sm:$0xff] %v5187_v27  ;;  %5930 = vst [vmem:[#allocation44_spill] sm:$0xff] %v5200_v36 }
  0x5a   : > { %3839 = vmatmul.mubr.msk.f32.vlgmr.msra.gmra.mrb[0].mxu1 %vm500_vm2, %v4615_v5  ;;  %4063 = vmatmul.mubr.msk.f32.gmra.mrb[16].mxu0 %vm500_vm2, %v5123_v45  ;;  %v5227_v33 = vsel %vm390_vm3, %v466_v38, %v467_v2  ;;  %v5243_v48 = vsel %vm390_vm3, %v467_v2, %v469_v37  ;;  %v392_v38 = vrot.slane %v4615_v5, 2  ;;  %v394_v37 = vrot.slane %v4627_v11, 2  ;;  %v5937_v5 = vld [vmem:[#allocation20_spill] sm:$0xff]  ;;  %v5938_v11 = vld [vmem:[#allocation22_spill] sm:$0xff] }
  0x5b   : > { %3887 = vmatpush3.msk.msra.mxu1 %vm565_vm0, %v4684_v35  ;;  %3841 = vmatprep.mubr.msk.f32.mxu1 %vm500_vm2, %v4618_v6  ;;  %v452_v35 = vrot.slane %v4932_v10, 2  ;;  %v5214_v6 = vld [vmem:[%s4609_s27 + $0x188] sm:$0xff]  ;;  %5933 = vst [vmem:[#allocation47_spill] sm:$0xff] %v5227_v33  ;;  %5934 = vst [vmem:[#allocation48_spill] sm:$0xff] %v5243_v48 }
  0x5c   : > { %4065 = vmatprep.mubr.msk.f32.mxu0 %vm500_vm2, %v5127_v0  ;;  %3936 = vmatprep.subr.msk.mxu1 %vm565_vm0, %v5136_v23 }
  0x5d   : > { %v5170_v14 = vsel %vm390_vm3, %v451_v62, %v452_v35  ;;  %v5183_v52 = vsel %vm390_vm3, %v452_v35, %v454_v34  ;;  %v461_v62 = vrot.slane %v5001_v20, 2  ;;  %v464_v35 = vrot.slane %v5028_v60, 2 }
  0x5e   : > { %3842 = vmatmul.mubr.msk.f32.gmra.mrb[2].mxu1 %vm500_vm2, %v4623_v9  ;;  %4066 = vmatmul.mubr.msk.f32.gmra.mrb[18].mxu0 %vm500_vm2, %v5147_v16  ;;  %5928 = vst [vmem:[#allocation42_spill] sm:$0xff] %v5183_v52  ;;  %v5211_v9 = vld [vmem:[%s4609_s27 + $0x180] sm:$0xff] }
  0x5f   : > { %3844 = vmatprep.mubr.msk.f32.mxu1 %vm500_vm2, %v4635_v15  ;;  %4068 = vmatprep.mubr.msk.f32.mxu0 %vm500_vm2, %v5151_v49  ;;  %v5204_v34 = vsel %vm390_vm3, %v461_v62, %v462_v57  ;;  %v5223_v60 = vsel %vm390_vm3, %v462_v57, %v464_v35  ;;  %v479_v62 = vrot.slane %v5211_v9, 2 }
  0x60   : > { %5931 = vst [vmem:[#allocation45_spill] sm:$0xff] %v5204_v34  ;;  %5932 = vst [vmem:[#allocation46_spill] sm:$0xff] %v5223_v60 }
  0x62   : > { %3845 = vmatmul.mubr.msk.f32.gmra.mrb[4].mxu1 %vm500_vm2, %v4640_v18  ;;  %4069 = vmatmul.mubr.msk.f32.gmra.mrb[20].mxu0 %vm500_vm2, %v5166_v56 }
  0x63   : > { %3847 = vmatprep.mubr.msk.f32.mxu1 %vm500_vm2, %v4652_v25  ;;  %4071 = vmatprep.mubr.msk.f32.mxu0 %vm500_vm2, %v5170_v14 }
  0x66   : > { %3848 = vmatmul.mubr.msk.f32.gmra.mrb[6].mxu1 %vm500_vm2, %v4655_v26  ;;  %4072 = vmatmul.mubr.msk.f32.gmra.mrb[22].mxu0 %vm500_vm2, %v5183_v52  ;;  %v5232_v52 = vld [vmem:[%s4609_s27 + $0x190] sm:$0x3] }
  0x67   : > { %3850 = vmatprep.mubr.msk.f32.mxu1 %vm500_vm2, %v4666_v31  ;;  %4074 = vmatprep.mubr.msk.f32.mxu0 %vm500_vm2, %v5187_v27  ;;  %v480_v27 = vrot.slane %v5214_v6, 2  ;;  %v482_v57 = vrot.slane %v5232_v52, 2 }
  0x69   : > { %v5247_v35 = vsel %vm390_vm3, %v479_v62, %v480_v27  ;;  %v5258_v2 = vsel %vm390_vm3, %v480_v27, %v482_v57  ;;  %v5273_v27 = vld [vmem:[%s5812_s1 + $0x20] sm:$0xf] }
  0x6a   : > { %3851 = vmatmul.mubr.msk.f32.gmra.mrb[8].mxu1 %vm500_vm2, %v4669_v32  ;;  %4075 = vmatmul.mubr.msk.f32.gmra.mrb[24].mxu0 %vm500_vm2, %v5200_v36  ;;  %5935 = vst [vmem:[#allocation49_spill] sm:$0xff] %v5247_v35  ;;  %5936 = vst [vmem:[#allocation50_spill] sm:$0xff] %v5258_v2  ;;  %v5942_v57 = vld [vmem:[#allocation30_spill] sm:$0xff] }
  0x6b   : > { %3853 = vmatprep.mubr.msk.f32.mxu1 %vm500_vm2, %v4706_v42  ;;  %4077 = vmatprep.mubr.msk.f32.mxu0 %vm500_vm2, %v5204_v34 }
  0x6e   : > { %3854 = vmatmul.mubr.msk.f32.gmra.mrb[10].mxu1 %vm500_vm2, %v4709_v43  ;;  %4078 = vmatmul.mubr.msk.f32.gmra.mrb[26].mxu0 %vm500_vm2, %v5223_v60 }
  0x6f   : > { %3856 = vmatprep.mubr.msk.f32.mxu1 %vm500_vm2, %v4734_v50  ;;  %4080 = vmatprep.mubr.msk.f32.mxu0 %vm500_vm2, %v5227_v33 }
  0x72   : > { %3857 = vmatmul.mubr.msk.f32.gmra.mrb[12].mxu1 %vm500_vm2, %v4737_v51  ;;  %4081 = vmatmul.mubr.msk.f32.gmra.mrb[28].mxu0 %vm500_vm2, %v5243_v48 }
  0x73   : > { %3859 = vmatprep.mubr.msk.f32.mxu1 %vm500_vm2, %v4760_v58  ;;  %4083 = vmatprep.mubr.msk.f32.mxu0 %vm500_vm2, %v5247_v35  ;;  %v5947_v35 = vld [vmem:[#allocation6_spill] sm:$0xff] }
  0x76   : > { %3860 = vmatmul.mubr.msk.f32.gmra.mrb[14].mxu1 %vm500_vm2, %v4763_v59  ;;  %4084 = vmatmul.mubr.msk.f32.gmra.mrb[30].mxu0 %vm500_vm2, %v5258_v2  ;;  %v5946_v2 = vld [vmem:[#allocation5_spill] sm:$0xff] }
  0x77   : > { %3862 = vmatprep.mubr.msk.f32.mxu1 %vm500_vm2, %v4786_v3  ;;  %4088 = vmatprep.mubr.msk.f32.mxu0 %vm500_vm2, %v4635_v15 }
  0x7a   : > { %3863 = vmatmul.mubr.msk.f32.gmra.mrb[16].mxu1 %vm500_vm2, %v4789_v7  ;;  %4089 = vmatmul.mubr.msk.f32.vlgmr.msra.gmra.mrb[0].mxu0 %vm500_vm2, %v4640_v18 }
  0x7b   : > { %3865 = vmatprep.mubr.msk.f32.mxu1 %vm500_vm2, %v4827_v28  ;;  %4137 = vmatpush3.msk.msra.mxu0 %vm565_vm0, %v4897_v30  ;;  %v391_v30 = vrot.slane %v4612_v4, 2  ;;  %v395_v4 = vsel %vm390_vm3, %v392_v38, %v394_v37  ;;  %v5944_v37 = vld [vmem:[#allocation36_spill] sm:$0xff] }
  0x7c   : > { %4091 = vmatprep.mubr.msk.f32.mxu0 %vm500_vm2, %v4652_v25  ;;  %4186 = vmatprep.subr.msk.mxu0 %vm565_vm0, %v5273_v27 }
  0x7d   : > { %v393_v62 = vsel %vm390_vm3, %v391_v30, %v392_v38  ;;  %v5943_v30 = vld [vmem:[#allocation32_spill] sm:$0xff]  ;;  %v5397_v38 = vld [vmem:[%s4609_s27 + $0x198] sm:$0xff] }
  0x7e   : > { %3866 = vmatmul.mubr.msk.f32.gmra.mrb[18].mxu1 %vm500_vm2, %v4830_v29  ;;  %4092 = vmatmul.mubr.msk.f32.gmra.mrb[2].mxu0 %vm500_vm2, %v4655_v26 }
  0x7f   : > { %3868 = vmatprep.mubr.msk.f32.mxu1 %vm500_vm2, %v4855_v53  ;;  %4094 = vmatprep.mubr.msk.f32.mxu0 %vm500_vm2, %v4666_v31 }
  0x82   : > { %3869 = vmatmul.mubr.msk.f32.gmra.mrb[20].mxu1 %vm500_vm2, %v4858_v55  ;;  %4095 = vmatmul.mubr.msk.f32.gmra.mrb[4].mxu0 %vm500_vm2, %v4669_v32 }
  0x83   : > { %3871 = vmatprep.mubr.msk.f32.mxu1 %vm500_vm2, %v4887_v22  ;;  %4097 = vmatprep.mubr.msk.f32.mxu0 %vm500_vm2, %v4706_v42 }
  0x86   : > { %3872 = vmatmul.mubr.msk.f32.gmra.mrb[22].mxu1 %vm500_vm2, %v4890_v24  ;;  %4098 = vmatmul.mubr.msk.f32.gmra.mrb[6].mxu0 %vm500_vm2, %v4709_v43 }
  0x87   : > { %3874 = vmatprep.mubr.msk.f32.mxu1 %vm500_vm2, %v4929_v8  ;;  %4100 = vmatprep.mubr.msk.f32.mxu0 %vm500_vm2, %v4734_v50 }
  0x8a   : > { %3875 = vmatmul.mubr.msk.f32.gmra.mrb[24].mxu1 %vm500_vm2, %v4932_v10  ;;  %4101 = vmatmul.mubr.msk.f32.gmra.mrb[8].mxu0 %vm500_vm2, %v4737_v51 }
  0x8b   : > { %3877 = vmatprep.mubr.msk.f32.mxu1 %vm500_vm2, %v4966_v46  ;;  %4103 = vmatprep.mubr.msk.f32.mxu0 %vm500_vm2, %v4760_v58 }
  0x8e   : > { %3878 = vmatmul.mubr.msk.f32.gmra.mrb[26].mxu1 %vm500_vm2, %v4969_v12  ;;  %4104 = vmatmul.mubr.msk.f32.gmra.mrb[10].mxu0 %vm500_vm2, %v4763_v59 }
  0x8f   : > { %3880 = vmatprep.mubr.msk.f32.mxu1 %vm500_vm2, %v5001_v20  ;;  %4106 = vmatprep.mubr.msk.f32.mxu0 %vm500_vm2, %v4786_v3 }
  0x92   : > { %3881 = vmatmul.mubr.msk.f32.gmra.mrb[28].mxu1 %vm500_vm2, %v5004_v54  ;;  %4107 = vmatmul.mubr.msk.f32.gmra.mrb[12].mxu0 %vm500_vm2, %v4789_v7 }
  0x93   : > { %3883 = vmatprep.mubr.msk.f32.mxu1 %vm500_vm2, %v5036_v40  ;;  %4109 = vmatprep.mubr.msk.f32.mxu0 %vm500_vm2, %v4827_v28 }
  0x96   : > { %3884 = vmatmul.mubr.msk.f32.gmra.mrb[30].mxu1 %vm500_vm2, %v5039_v44  ;;  %4110 = vmatmul.mubr.msk.f32.gmra.mrb[14].mxu0 %vm500_vm2, %v4830_v29 }
  0x97   : > { %3888 = vmatprep.mubr.msk.f32.mxu1 %vm500_vm2, %v393_v62  ;;  %4112 = vmatprep.mubr.msk.f32.mxu0 %vm500_vm2, %v4855_v53  ;;  %v5408_v62 = vld [vmem:[%s4609_s27 + $0x1a0] sm:$0xff] }
  0x9a   : > { %3889 = vmatmul.mubr.msk.f32.vlgmr.msra.gmra.mrb[0].mxu1 %vm500_vm2, %v395_v4  ;;  %4113 = vmatmul.mubr.msk.f32.gmra.mrb[16].mxu0 %vm500_vm2, %v4858_v55  ;;  %v5945_v4 = vld [vmem:[#allocation4_spill] sm:$0xff] }
  0x9b   : > { %3937 = vmatpush3.msk.msra.mxu1 %vm565_vm0, %v5136_v23  ;;  %3891 = vmatprep.mubr.msk.f32.mxu1 %vm500_vm2, %v4850_v47  ;;  %v5939_v47 = vld [vmem:[#allocation24_spill] sm:$0xff] }
  0x9c   : > { %4115 = vmatprep.mubr.msk.f32.mxu0 %vm500_vm2, %v4887_v22  ;;  %4236 = vmatprep.subr.msk.mxu1 %vm565_vm0, %v4587_v1  ;;  %v5941_v23 = vld [vmem:[#allocation28_spill] sm:$0xff] }
  0x9e   : > { %3892 = vmatmul.mubr.msk.f32.gmra.mrb[2].mxu1 %vm500_vm2, %v4871_v63  ;;  %4116 = vmatmul.mubr.msk.f32.gmra.mrb[18].mxu0 %vm500_vm2, %v4890_v24  ;;  %v5940_v63 = vld [vmem:[#allocation26_spill] sm:$0xff] }
  0x9f   : > { %3894 = vmatprep.mubr.msk.f32.mxu1 %vm500_vm2, %v4882_v21  ;;  %4118 = vmatprep.mubr.msk.f32.mxu0 %vm500_vm2, %v4929_v8 }
  0xa2   : > { %3895 = vmatmul.mubr.msk.f32.gmra.mrb[4].mxu1 %vm500_vm2, %v5937_v5  ;;  %4119 = vmatmul.mubr.msk.f32.gmra.mrb[20].mxu0 %vm500_vm2, %v4932_v10 }
  0xa3   : > { %3897 = vmatprep.mubr.msk.f32.mxu1 %vm500_vm2, %v5938_v11  ;;  %4121 = vmatprep.mubr.msk.f32.mxu0 %vm500_vm2, %v4966_v46 }
  0xa6   : > { %3898 = vmatmul.mubr.msk.f32.gmra.mrb[6].mxu1 %vm500_vm2, %v5939_v47  ;;  %4122 = vmatmul.mubr.msk.f32.gmra.mrb[22].mxu0 %vm500_vm2, %v4969_v12 }
  0xa7   : > { %3900 = vmatprep.mubr.msk.f32.mxu1 %vm500_vm2, %v5940_v63  ;;  %4124 = vmatprep.mubr.msk.f32.mxu0 %vm500_vm2, %v5001_v20 }
  0xaa   : > { %3901 = vmatmul.mubr.msk.f32.gmra.mrb[8].mxu1 %vm500_vm2, %v5941_v23  ;;  %4125 = vmatmul.mubr.msk.f32.gmra.mrb[24].mxu0 %vm500_vm2, %v5004_v54 }
  0xab   : > { %3903 = vmatprep.mubr.msk.f32.mxu1 %vm500_vm2, %v5942_v57  ;;  %4127 = vmatprep.mubr.msk.f32.mxu0 %vm500_vm2, %v5036_v40 }
  0xae   : > { %3904 = vmatmul.mubr.msk.f32.gmra.mrb[10].mxu1 %vm500_vm2, %v5943_v30  ;;  %4128 = vmatmul.mubr.msk.f32.gmra.mrb[26].mxu0 %vm500_vm2, %v5039_v44  ;;  %v5948_v44 = vld [vmem:[#allocation7_spill] sm:$0xff] }
  0xaf   : > { %3906 = vmatprep.mubr.msk.f32.mxu1 %vm500_vm2, %v5031_v19  ;;  %4130 = vmatprep.mubr.msk.f32.mxu0 %vm500_vm2, %v5211_v9 }
  0xb2   : > { %3907 = vmatmul.mubr.msk.f32.gmra.mrb[12].mxu1 %vm500_vm2, %v5944_v37  ;;  %4131 = vmatmul.mubr.msk.f32.gmra.mrb[28].mxu0 %vm500_vm2, %v5214_v6 }
  0xb3   : > { %3909 = vmatprep.mubr.msk.f32.mxu1 %vm500_vm2, %v5066_v39  ;;  %4133 = vmatprep.mubr.msk.f32.mxu0 %vm500_vm2, %v5397_v38 }
  0xb6   : > { %3910 = vmatmul.mubr.msk.f32.gmra.mrb[14].mxu1 %vm500_vm2, %v5083_v41  ;;  %4134 = vmatmul.mubr.msk.f32.gmra.mrb[30].mxu0 %vm500_vm2, %v5408_v62 }
  0xb7   : > { %3912 = vmatprep.mubr.msk.f32.mxu1 %vm500_vm2, %v5090_v13  ;;  %4138 = vmatprep.mubr.msk.f32.mxu0 %vm500_vm2, %v5945_v4  ;;  %v5949_v4 = vld [vmem:[#allocation8_spill] sm:$0xff] }
  0xba   : > { %3913 = vmatmul.mubr.msk.f32.gmra.mrb[16].mxu1 %vm500_vm2, %v5106_v17  ;;  %4139 = vmatmul.mubr.msk.f32.vlgmr.msra.gmra.mrb[0].mxu0 %vm500_vm2, %v5946_v2  ;;  %v5950_v2 = vld [vmem:[#allocation9_spill] sm:$0xff] }
  0xbb   : > { %3915 = vmatprep.mubr.msk.f32.mxu1 %vm500_vm2, %v5110_v61  ;;  %4187 = vmatpush3.msk.msra.mxu0 %vm565_vm0, %v5273_v27  ;;  %v5953_v27 = vld [vmem:[#allocation12_spill] sm:$0xff] }
  0xbc   : > { %4141 = vmatprep.mubr.msk.f32.mxu0 %vm500_vm2, %v5947_v35  ;;  %v5951_v35 = vld [vmem:[#allocation10_spill] sm:$0xff] }
  0xbe   : > { %3916 = vmatmul.mubr.msk.f32.gmra.mrb[18].mxu1 %vm500_vm2, %v5123_v45  ;;  %4142 = vmatmul.mubr.msk.f32.gmra.mrb[2].mxu0 %vm500_vm2, %v5948_v44  ;;  %v5952_v44 = vld [vmem:[#allocation11_spill] sm:$0xff] }
  0xbf   : > { %3918 = vmatprep.mubr.msk.f32.mxu1 %vm500_vm2, %v5127_v0  ;;  %4144 = vmatprep.mubr.msk.f32.mxu0 %vm500_vm2, %v5949_v4  ;;  %v5954_v4 = vld [vmem:[#allocation42_spill] sm:$0xff] }
  0xc2   : > { %3919 = vmatmul.mubr.msk.f32.gmra.mrb[20].mxu1 %vm500_vm2, %v5147_v16  ;;  %4145 = vmatmul.mubr.msk.f32.gmra.mrb[4].mxu0 %vm500_vm2, %v5950_v2  ;;  %v5955_v2 = vld [vmem:[#allocation13_spill] sm:$0xff] }
  0xc3   : > { %3921 = vmatprep.mubr.msk.f32.mxu1 %vm500_vm2, %v5151_v49  ;;  %4147 = vmatprep.mubr.msk.f32.mxu0 %vm500_vm2, %v5951_v35  ;;  %v5956_v49 = vld [vmem:[#allocation43_spill] sm:$0xff]  ;;  %v5957_v35 = vld [vmem:[#allocation14_spill] sm:$0xff] }
  0xc6   : > { %3922 = vmatmul.mubr.msk.f32.gmra.mrb[22].mxu1 %vm500_vm2, %v5166_v56  ;;  %4148 = vmatmul.mubr.msk.f32.gmra.mrb[6].mxu0 %vm500_vm2, %v5952_v44  ;;  %v5958_v44 = vld [vmem:[#allocation15_spill] sm:$0xff] }
  0xc7   : > { %3924 = vmatprep.mubr.msk.f32.mxu1 %vm500_vm2, %v5170_v14  ;;  %4150 = vmatprep.mubr.msk.f32.mxu0 %vm500_vm2, %v5953_v27  ;;  %v5959_v27 = vld [vmem:[#allocation16_spill] sm:$0xff] }
  0xca   : > { %3925 = vmatmul.mubr.msk.f32.gmra.mrb[24].mxu1 %vm500_vm2, %v5954_v4  ;;  %4151 = vmatmul.mubr.msk.f32.gmra.mrb[8].mxu0 %vm500_vm2, %v5955_v2  ;;  %v5960_v2 = vld [vmem:[#allocation17_spill] sm:$0xff] }
  0xcb   : > { %3927 = vmatprep.mubr.msk.f32.mxu1 %vm500_vm2, %v5956_v49  ;;  %4153 = vmatprep.mubr.msk.f32.mxu0 %vm500_vm2, %v5957_v35  ;;  %v5961_v35 = vld [vmem:[#allocation18_spill] sm:$0xff] }
  0xce   : > { %3928 = vmatmul.mubr.msk.f32.gmra.mrb[26].mxu1 %vm500_vm2, %v5200_v36  ;;  %4154 = vmatmul.mubr.msk.f32.gmra.mrb[10].mxu0 %vm500_vm2, %v5958_v44  ;;  %v5962_v44 = vld [vmem:[#allocation19_spill] sm:$0xff] }
  0xcf   : > { %3930 = vmatprep.mubr.msk.f32.mxu1 %vm500_vm2, %v5204_v34  ;;  %4156 = vmatprep.mubr.msk.f32.mxu0 %vm500_vm2, %v5959_v27  ;;  %v5963_v34 = vld [vmem:[#allocation2_spill] sm:$0xff]  ;;  %v5964_v27 = vld [vmem:[#allocation21_spill] sm:$0xff]  ;;  %v5535_v36 = vld [vmem:[%s4609_s27 + $0x1a8] sm:$0x3] }
  0xd2   : > { %3931 = vmatmul.mubr.msk.f32.gmra.mrb[28].mxu1 %vm500_vm2, %v5223_v60  ;;  %4157 = vmatmul.mubr.msk.f32.gmra.mrb[12].mxu0 %vm500_vm2, %v5960_v2  ;;  %v5965_v60 = vld [vmem:[#allocation3_spill] sm:$0xff] }
  0xd3   : > { %3933 = vmatprep.mubr.msk.f32.mxu1 %vm500_vm2, %v5227_v33  ;;  %4159 = vmatprep.mubr.msk.f32.mxu0 %vm500_vm2, %v5961_v35  ;;  %v5966_v2 = vld [vmem:[#allocation23_spill] sm:$0xff]  ;;  %v5974_v33 = vld [vmem:[#allocation38_spill] sm:$0xff] }
  0xd6   : > { %3934 = vmatmul.mubr.msk.f32.gmra.mrb[30].mxu1 %vm500_vm2, %v5243_v48  ;;  %4160 = vmatmul.mubr.msk.f32.gmra.mrb[14].mxu0 %vm500_vm2, %v5962_v44  ;;  %v5967_v48 = vld [vmem:[#allocation25_spill] sm:$0xff] }
  0xd7   : > { %3938 = vmatprep.mubr.msk.f32.mxu1 %vm500_vm2, %v5963_v34  ;;  %4162 = vmatprep.mubr.msk.f32.mxu0 %vm500_vm2, %v5964_v27  ;;  %v5968_v34 = vld [vmem:[#allocation27_spill] sm:$0xff] }
  0xda   : > { %3939 = vmatmul.mubr.msk.f32.vlgmr.msra.gmra.mrb[0].mxu1 %vm500_vm2, %v5965_v60  ;;  %4163 = vmatmul.mubr.msk.f32.gmra.mrb[16].mxu0 %vm500_vm2, %v5966_v2  ;;  %v5969_v60 = vld [vmem:[#allocation29_spill] sm:$0xff] }
  0xdb   : > { %4237 = vmatpush3.msk.msra.mxu1 %vm565_vm0, %v4587_v1  ;;  %3941 = vmatprep.mubr.msk.f32.mxu1 %vm500_vm2, %v4635_v15  ;;  %v5970_v1 = vld [vmem:[#allocation31_spill] sm:$0xff]  ;;  %v5971_v15 = vld [vmem:[#allocation33_spill] sm:$0xff] }
  0xdc   : > { %4165 = vmatprep.mubr.msk.f32.mxu0 %vm500_vm2, %v5967_v48 }
  0xde   : > { %3942 = vmatmul.mubr.msk.f32.gmra.mrb[2].mxu1 %vm500_vm2, %v4640_v18  ;;  %4166 = vmatmul.mubr.msk.f32.gmra.mrb[18].mxu0 %vm500_vm2, %v5968_v34  ;;  %v5972_v18 = vld [vmem:[#allocation35_spill] sm:$0xff] }
  0xdf   : > { %3944 = vmatprep.mubr.msk.f32.mxu1 %vm500_vm2, %v4652_v25  ;;  %4168 = vmatprep.mubr.msk.f32.mxu0 %vm500_vm2, %v5969_v60  ;;  %v5973_v25 = vld [vmem:[#allocation37_spill] sm:$0xff] }
  0xe2   : > { %3945 = vmatmul.mubr.msk.f32.gmra.mrb[4].mxu1 %vm500_vm2, %v4655_v26  ;;  %4169 = vmatmul.mubr.msk.f32.gmra.mrb[20].mxu0 %vm500_vm2, %v5970_v1  ;;  %v474_v26 = vrot.slane %v5211_v9, 1 }
  0xe3   : > { %3947 = vmatprep.mubr.msk.f32.mxu1 %vm500_vm2, %v4666_v31  ;;  %4171 = vmatprep.mubr.msk.f32.mxu0 %vm500_vm2, %v5971_v15  ;;  %v475_v31 = vrot.slane %v5214_v6, 1 }
  0xe5   : > { %v5532_v15 = vsel %vm309_vm1, %v474_v26, %v475_v31 }
  0xe6   : > { %3948 = vmatmul.mubr.msk.f32.gmra.mrb[6].mxu1 %vm500_vm2, %v4669_v32  ;;  %4172 = vmatmul.mubr.msk.f32.gmra.mrb[22].mxu0 %vm500_vm2, %v5972_v18  ;;  %v5975_v32 = vld [vmem:[#allocation39_spill] sm:$0xff]  ;;  %v488_v18 = vrot.slane %v5408_v62, 1 }
  0xe7   : > { %3950 = vmatprep.mubr.msk.f32.mxu1 %vm500_vm2, %v4706_v42  ;;  %4174 = vmatprep.mubr.msk.f32.mxu0 %vm500_vm2, %v5973_v25  ;;  %v477_v42 = vrot.slane %v5232_v52, 1  ;;  %v487_v25 = vrot.slane %v5397_v38, 1  ;;  %v490_v52 = vrot.slane %v5535_v36, 1 }
  0xe9   : > { %v489_v26 = vsel %vm309_vm1, %v487_v25, %v488_v18 }
  0xea   : > { %3951 = vmatmul.mubr.msk.f32.gmra.mrb[8].mxu1 %vm500_vm2, %v4709_v43  ;;  %4175 = vmatmul.mubr.msk.f32.gmra.mrb[24].mxu0 %vm500_vm2, %v5974_v33  ;;  %v5976_v43 = vld [vmem:[#allocation40_spill] sm:$0xff] }
  0xeb   : > { %3953 = vmatprep.mubr.msk.f32.mxu1 %vm500_vm2, %v4734_v50  ;;  %4177 = vmatprep.mubr.msk.f32.mxu0 %vm500_vm2, %v5975_v32  ;;  %v5546_v50 = vsel %vm309_vm1, %v475_v31, %v477_v42 }
  0xee   : > { %3954 = vmatmul.mubr.msk.f32.gmra.mrb[10].mxu1 %vm500_vm2, %v4737_v51  ;;  %4178 = vmatmul.mubr.msk.f32.gmra.mrb[26].mxu0 %vm500_vm2, %v5976_v43  ;;  %v491_v51 = vsel %vm309_vm1, %v488_v18, %v490_v52 }
  0xef   : > { %3956 = vmatprep.mubr.msk.f32.mxu1 %vm500_vm2, %v4760_v58  ;;  %4180 = vmatprep.mubr.msk.f32.mxu0 %vm500_vm2, %v5532_v15  ;;  %v5980_v58 = vld [vmem:[#allocation33_spill] sm:$0xff] }
  0xf2   : > { %3957 = vmatmul.mubr.msk.f32.gmra.mrb[12].mxu1 %vm500_vm2, %v4763_v59  ;;  %4181 = vmatmul.mubr.msk.f32.gmra.mrb[28].mxu0 %vm500_vm2, %v5546_v50  ;;  %v5981_v59 = vld [vmem:[#allocation45_spill] sm:$0xff] }
  0xf3   : > { %3959 = vmatprep.mubr.msk.f32.mxu1 %vm500_vm2, %v4786_v3  ;;  %4183 = vmatprep.mubr.msk.f32.mxu0 %vm500_vm2, %v489_v26  ;;  %v5982_v3 = vld [vmem:[#allocation35_spill] sm:$0xff] }
  0xf6   : > { %3960 = vmatmul.mubr.msk.f32.gmra.mrb[14].mxu1 %vm500_vm2, %v4789_v7  ;;  %4184 = vmatmul.mubr.msk.f32.gmra.mrb[30].mxu0 %vm500_vm2, %v491_v51  ;;  %v5983_v7 = vld [vmem:[#allocation46_spill] sm:$0xff] }
  0xf7   : > { %3962 = vmatprep.mubr.msk.f32.mxu1 %vm500_vm2, %v4827_v28  ;;  %4188 = vmatprep.mubr.msk.f32.mxu0 %vm500_vm2, %v4882_v21  ;;  %v492_v28 = vrot.slane %v5397_v38, 2  ;;  %v495_v21 = vrot.slane %v5535_v36, 2 }
  0xfa   : > { %3963 = vmatmul.mubr.msk.f32.gmra.mrb[16].mxu1 %vm500_vm2, %v4830_v29  ;;  %4189 = vmatmul.mubr.msk.f32.vlgmr.msra.gmra.mrb[0].mxu0 %vm500_vm2, %v5937_v5  ;;  %v493_v29 = vrot.slane %v5408_v62, 2 }
  0xfb   : > { %3965 = vmatprep.mubr.msk.f32.mxu1 %vm500_vm2, %v4855_v53  ;;  %4191 = vmatprep.mubr.msk.f32.mxu0 %vm500_vm2, %v5938_v11  ;;  %v5986_v53 = vld [vmem:[#allocation48_spill] sm:$0xff] }
  0xfe   : > { %3966 = vmatmul.mubr.msk.f32.gmra.mrb[18].mxu1 %vm500_vm2, %v4858_v55  ;;  %4192 = vmatmul.mubr.msk.f32.gmra.mrb[2].mxu0 %vm500_vm2, %v5939_v47  ;;  %v5987_v55 = vld [vmem:[#allocation49_spill] sm:$0xff] }
  0xff   : > { %3968 = vmatprep.mubr.msk.f32.mxu1 %vm500_vm2, %v4887_v22  ;;  %4194 = vmatprep.mubr.msk.f32.mxu0 %vm500_vm2, %v5940_v63  ;;  %v5985_v22 = vld [vmem:[#allocation47_spill] sm:$0xff] }
 0x102   : > { %3969 = vmatmul.mubr.msk.f32.gmra.mrb[20].mxu1 %vm500_vm2, %v4890_v24  ;;  %4195 = vmatmul.mubr.msk.f32.gmra.mrb[4].mxu0 %vm500_vm2, %v5941_v23  ;;  %v494_v24 = vsel %vm390_vm3, %v492_v28, %v493_v29 }
 0x103   : > { %3971 = vmatprep.mubr.msk.f32.mxu1 %vm500_vm2, %v4929_v8  ;;  %4197 = vmatprep.mubr.msk.f32.mxu0 %vm500_vm2, %v5942_v57  ;;  %v5984_v8 = vld [vmem:[#allocation37_spill] sm:$0xff] }
 0x106   : > { %3972 = vmatmul.mubr.msk.f32.gmra.mrb[22].mxu1 %vm500_vm2, %v4932_v10  ;;  %4198 = vmatmul.mubr.msk.f32.gmra.mrb[6].mxu0 %vm500_vm2, %v5943_v30  ;;  %v5988_v10 = vld [vmem:[#allocation50_spill] sm:$0xff] }
 0x107   : > { %3974 = vmatprep.mubr.msk.f32.mxu1 %vm500_vm2, %v4966_v46  ;;  %4200 = vmatprep.mubr.msk.f32.mxu0 %vm500_vm2, %v5031_v19  ;;  %v5977_v46 = vld [vmem:[#allocation34_spill] sm:$0xff] }
 0x10a   : > { %3975 = vmatmul.mubr.msk.f32.gmra.mrb[24].mxu1 %vm500_vm2, %v4969_v12  ;;  %4201 = vmatmul.mubr.msk.f32.gmra.mrb[8].mxu0 %vm500_vm2, %v5944_v37  ;;  %v496_v12 = vsel %vm390_vm3, %v493_v29, %v495_v21 }
 0x10b   : > { %3977 = vmatprep.mubr.msk.f32.mxu1 %vm500_vm2, %v5001_v20  ;;  %4203 = vmatprep.mubr.msk.f32.mxu0 %vm500_vm2, %v5066_v39 }
 0x10e   : > { %3978 = vmatmul.mubr.msk.f32.gmra.mrb[26].mxu1 %vm500_vm2, %v5004_v54  ;;  %4204 = vmatmul.mubr.msk.f32.gmra.mrb[10].mxu0 %vm500_vm2, %v5083_v41 }
 0x10f   : > { %3980 = vmatprep.mubr.msk.f32.mxu1 %vm500_vm2, %v5036_v40  ;;  %4206 = vmatprep.mubr.msk.f32.mxu0 %vm500_vm2, %v5090_v13 }
 0x112   : > { %3981 = vmatmul.mubr.msk.f32.gmra.mrb[28].mxu1 %vm500_vm2, %v5977_v46  ;;  %4207 = vmatmul.mubr.msk.f32.gmra.mrb[12].mxu0 %vm500_vm2, %v5106_v17 }
 0x113   : > { %3983 = vmatprep.mubr.msk.f32.mxu1 %vm500_vm2, %v5211_v9  ;;  %4209 = vmatprep.mubr.msk.f32.mxu0 %vm500_vm2, %v5110_v61  ;;  %v5978_v9 = vld [vmem:[#allocation41_spill] sm:$0xff] }
 0x116   : > { %3984 = vmatmul.mubr.msk.f32.gmra.mrb[30].mxu1 %vm500_vm2, %v5214_v6  ;;  %4210 = vmatmul.mubr.msk.f32.gmra.mrb[14].mxu0 %vm500_vm2, %v5123_v45  ;;  %v5979_v6 = vld [vmem:[#allocation44_spill] sm:$0xff] }
 0x117   : > { %4012 = vmatprep.mubr.msk.f32.mxu1 %vm500_vm2, %v5961_v35  ;;  %4212 = vmatprep.mubr.msk.f32.mxu0 %vm500_vm2, %v5127_v0 }
 0x11a   : > { %4013 = vmatmul.mubr.msk.f32.vlgmr.msra.gmra.mrb[16].mxu1 %vm500_vm2, %v5962_v44  ;;  %4213 = vmatmul.mubr.msk.f32.gmra.mrb[16].mxu0 %vm500_vm2, %v5147_v16 }
 0x11b   : > { %4015 = vmatprep.mubr.msk.f32.mxu1 %vm500_vm2, %v5964_v27  ;;  %4215 = vmatprep.mubr.msk.f32.mxu0 %vm500_vm2, %v5978_v9 }
 0x11e   : > { %4016 = vmatmul.mubr.msk.f32.gmra.mrb[18].mxu1 %vm500_vm2, %v5966_v2  ;;  %4216 = vmatmul.mubr.msk.f32.gmra.mrb[18].mxu0 %vm500_vm2, %v5166_v56 }
 0x11f   : > { %4018 = vmatprep.mubr.msk.f32.mxu1 %vm500_vm2, %v5967_v48  ;;  %4218 = vmatprep.mubr.msk.f32.mxu0 %vm500_vm2, %v5170_v14  ;;  %v5698_v48 = vld [vmem:[%s5813_s2] ss:$0 sm:$0xff] }
 0x122   : > { %4019 = vmatmul.mubr.msk.f32.gmra.mrb[20].mxu1 %vm500_vm2, %v5968_v34  ;;  %4219 = vmatmul.mubr.msk.f32.gmra.mrb[20].mxu0 %vm500_vm2, %v5954_v4 }
 0x123   : > { %4021 = vmatprep.mubr.msk.f32.mxu1 %vm500_vm2, %v5969_v60  ;;  %4221 = vmatprep.mubr.msk.f32.mxu0 %vm500_vm2, %v5956_v49 }
 0x126   : > { %4022 = vmatmul.mubr.msk.f32.gmra.mrb[22].mxu1 %vm500_vm2, %v5970_v1  ;;  %4222 = vmatmul.mubr.msk.f32.gmra.mrb[22].mxu0 %vm500_vm2, %v5979_v6 }
 0x127   : > { %4024 = vmatprep.mubr.msk.f32.mxu1 %vm500_vm2, %v5980_v58  ;;  %4224 = vmatprep.mubr.msk.f32.mxu0 %vm500_vm2, %v5981_v59 }
 0x12a   : > { %4025 = vmatmul.mubr.msk.f32.gmra.mrb[24].mxu1 %vm500_vm2, %v5982_v3  ;;  %4225 = vmatmul.mubr.msk.f32.gmra.mrb[24].mxu0 %vm500_vm2, %v5983_v7 }
 0x12b   : > { %4027 = vmatprep.mubr.msk.f32.mxu1 %vm500_vm2, %v5984_v8  ;;  %4227 = vmatprep.mubr.msk.f32.mxu0 %vm500_vm2, %v5985_v22 }
 0x12e   : > { %4028 = vmatmul.mubr.msk.f32.gmra.mrb[26].mxu1 %vm500_vm2, %v5974_v33  ;;  %4228 = vmatmul.mubr.msk.f32.gmra.mrb[26].mxu0 %vm500_vm2, %v5986_v53 }
 0x12f   : > { %4030 = vmatprep.mubr.msk.f32.mxu1 %vm500_vm2, %v5975_v32  ;;  %4230 = vmatprep.mubr.msk.f32.mxu0 %vm500_vm2, %v5987_v55 }
 0x132   : > { %4031 = vmatmul.mubr.msk.f32.gmra.mrb[28].mxu1 %vm500_vm2, %v5976_v43  ;;  %4231 = vmatmul.mubr.msk.f32.gmra.mrb[28].mxu0 %vm500_vm2, %v5988_v10 }
 0x133   : > { %4033 = vmatprep.mubr.msk.f32.mxu1 %vm500_vm2, %v5532_v15  ;;  %4233 = vmatprep.mubr.msk.f32.mxu0 %vm500_vm2, %v494_v24 }
 0x136   : > { %4034 = vmatmul.mubr.msk.f32.gmra.mrb[30].mxu1 %vm500_vm2, %v5546_v50  ;;  %4234 = vmatmul.mubr.msk.f32.gmra.mrb[30].mxu0 %vm500_vm2, %v496_v12 }
 0x1ad   : > { %v3940_v40 = vpop.f32.mrb[0].mxu1 }
 0x1ae   : > { %v1487_v20 = vpop.f32.mrb[1].mxu1 }
 0x1b1   : > { %v3943_v54 = vpop.f32.mrb[2].mxu1 }
 0x1b2   : > { %v1497_v19 = vpop.f32.mrb[3].mxu1 }
 0x1b5   : > { %v3946_v13 = vpop.f32.mrb[4].mxu1 }
 0x1b6   : > { %v1507_v39 = vpop.f32.mrb[5].mxu1 }
 0x1b9   : > { %v3949_v41 = vpop.f32.mrb[6].mxu1 }
 0x1ba   : > { %v1517_v17 = vpop.f32.mrb[7].mxu1 }
 0x1bd   : > { %v3952_v61 = vpop.f32.mrb[8].mxu1 }
 0x1be   : > { %v1527_v45 = vpop.f32.mrb[9].mxu1 }
 0x1c1   : > { %v3955_v0 = vpop.f32.mrb[10].mxu1 }
 0x1c2   : > { %v1537_v16 = vpop.f32.mrb[11].mxu1 }
 0x1c5   : > { %v3958_v49 = vpop.f32.mrb[12].mxu1 }
 0x1c6   : > { %v1547_v56 = vpop.f32.mrb[13].mxu1 }
 0x1c9   : > { %v3961_v14 = vpop.f32.mrb[14].mxu1 }
 0x1ca   : > { %v5692_v36 = vpop.f32.mrb[15].mxu1 }
 0x1cd   : > { %v4190_v33 = vpop.f32.mrb[0].mxu0 }
 0x1ce   : > { %v4238_v5 = vadd.f32 %v4190_v33, %v3940_v40  ;;  %v2817_v11 = vpop.f32.mrb[1].mxu0 }
 0x1cf   : > { %v4239_v47 = vadd.f32 %v2817_v11, %v1487_v20 }
 0x1d0   : > { %v3016_v63 = vadd.f32 %v4238_v5, %v5698_v48 }
 0x1d1   : > { %v3015_v23 = vadd.f32 %v4239_v47, %v5698_v48  ;;  %v4193_v57 = vpop.f32.mrb[2].mxu0 }
 0x1d2   : > { %3049 = vst.msk [vmem:[%s5703_s20 + $0x8] sm:$0xff] %vm3047_vm4, %v3016_v63  ;;  %v4240_v30 = vadd.f32 %v4193_v57, %v3943_v54  ;;  %v2827_v38 = vpop.f32.mrb[3].mxu0 }
 0x1d3   : > { %3048 = vst.msk [vmem:[%s5703_s20] sm:$0xff] %vm3047_vm4, %v3015_v23  ;;  %v4241_v37 = vadd.f32 %v2827_v38, %v1497_v19 }
 0x1d4   : > { %v3018_v62 = vadd.f32 %v4240_v30, %v5698_v48 }
 0x1d5   : > { %v3017_v4 = vadd.f32 %v4241_v37, %v5698_v48  ;;  %v4196_v35 = vpop.f32.mrb[4].mxu0 }
 0x1d6   : > { %3051 = vst.msk [vmem:[%s5703_s20 + $0x18] sm:$0xff] %vm3047_vm4, %v3018_v62  ;;  %v4242_v44 = vadd.f32 %v4196_v35, %v3946_v13  ;;  %v2837_v27 = vpop.f32.mrb[5].mxu0 }
 0x1d7   : > { %3050 = vst.msk [vmem:[%s5703_s20 + $0x10] sm:$0xff] %vm3047_vm4, %v3017_v4  ;;  %v4243_v2 = vadd.f32 %v2837_v27, %v1507_v39 }
 0x1d8   : > { %v3020_v34 = vadd.f32 %v4242_v44, %v5698_v48 }
 0x1d9   : > { %v3019_v60 = vadd.f32 %v4243_v2, %v5698_v48  ;;  %v4199_v1 = vpop.f32.mrb[6].mxu0 }
 0x1da   : > { %3053 = vst.msk [vmem:[%s5703_s20 + $0x28] sm:$0xff] %vm3047_vm4, %v3020_v34  ;;  %v4244_v15 = vadd.f32 %v4199_v1, %v3949_v41  ;;  %v2847_v18 = vpop.f32.mrb[7].mxu0 }
 0x1db   : > { %3052 = vst.msk [vmem:[%s5703_s20 + $0x20] sm:$0xff] %vm3047_vm4, %v3019_v60  ;;  %v4245_v25 = vadd.f32 %v2847_v18, %v1517_v17 }
 0x1dc   : > { %v3022_v31 = vadd.f32 %v4244_v15, %v5698_v48 }
 0x1dd   : > { %v3021_v32 = vadd.f32 %v4245_v25, %v5698_v48  ;;  %v4202_v42 = vpop.f32.mrb[8].mxu0 }
 0x1de   : > { %3055 = vst.msk [vmem:[%s5703_s20 + $0x38] sm:$0xff] %vm3047_vm4, %v3022_v31  ;;  %v4246_v43 = vadd.f32 %v4202_v42, %v3952_v61  ;;  %v2857_v50 = vpop.f32.mrb[9].mxu0 }
 0x1df   : > { %3054 = vst.msk [vmem:[%s5703_s20 + $0x30] sm:$0xff] %vm3047_vm4, %v3021_v32  ;;  %v4247_v52 = vadd.f32 %v2857_v50, %v1527_v45 }
 0x1e0   : > { %v3024_v26 = vadd.f32 %v4246_v43, %v5698_v48 }
 0x1e1   : > { %v3023_v51 = vadd.f32 %v4247_v52, %v5698_v48  ;;  %v4205_v46 = vpop.f32.mrb[10].mxu0 }
 0x1e2   : > { %3057 = vst.msk [vmem:[%s5703_s20 + $0x48] sm:$0xff] %vm3047_vm4, %v3024_v26  ;;  %v4248_v9 = vadd.f32 %v4205_v46, %v3955_v0  ;;  %v2867_v6 = vpop.f32.mrb[11].mxu0 }
 0x1e3   : > { %3056 = vst.msk [vmem:[%s5703_s20 + $0x40] sm:$0xff] %vm3047_vm4, %v3023_v51  ;;  %v4249_v58 = vadd.f32 %v2867_v6, %v1537_v16 }
 0x1e4   : > { %v3026_v59 = vadd.f32 %v4248_v9, %v5698_v48 }
 0x1e5   : > { %v3025_v3 = vadd.f32 %v4249_v58, %v5698_v48  ;;  %v4208_v7 = vpop.f32.mrb[12].mxu0 }
 0x1e6   : > { %3059 = vst.msk [vmem:[%s5703_s20 + $0x58] sm:$0xff] %vm3047_vm4, %v3026_v59  ;;  %v4250_v8 = vadd.f32 %v4208_v7, %v3958_v49  ;;  %v2877_v22 = vpop.f32.mrb[13].mxu0 }
 0x1e7   : > { %3058 = vst.msk [vmem:[%s5703_s20 + $0x50] sm:$0xff] %vm3047_vm4, %v3025_v3  ;;  %v4251_v28 = vadd.f32 %v2877_v22, %v1547_v56 }
 0x1e8   : > { %v3028_v29 = vadd.f32 %v4250_v8, %v5698_v48 }
 0x1e9   : > { %v3027_v53 = vadd.f32 %v4251_v28, %v5698_v48  ;;  %v4211_v55 = vpop.f32.mrb[14].mxu0 }
 0x1ea   : > { %3061 = vst.msk [vmem:[%s5703_s20 + $0x68] sm:$0xff] %vm3047_vm4, %v3028_v29  ;;  %v4252_v21 = vadd.f32 %v4211_v55, %v3961_v14  ;;  %v2887_v24 = vpop.f32.mrb[15].mxu0 }
 0x1eb   : > { %3060 = vst.msk [vmem:[%s5703_s20 + $0x60] sm:$0xff] %vm3047_vm4, %v3027_v53  ;;  %v4253_v10 = vadd.f32 %v2887_v24, %v5692_v36 }
 0x1ec   : > { %v3030_v12 = vadd.f32 %v4252_v21, %v5698_v48 }
 0x1ed   : > { %v4014_v40 = vpop.f32.mrb[16].mxu1  ;;  %v3029_v20 = vadd.f32 %v4253_v10, %v5698_v48  ;;  %v4214_v54 = vpop.f32.mrb[16].mxu0 }
 0x1ee   : > { %v1833_v19 = vpop.f32.mrb[17].mxu1  ;;  %3063 = vst.msk [vmem:[%s5703_s20 + $0x78] sm:$0xff] %vm3047_vm4, %v3030_v12  ;;  %v4254_v13 = vadd.f32 %v4214_v54, %v4014_v40  ;;  %v2897_v39 = vpop.f32.mrb[17].mxu0 }
 0x1ef   : > { %3062 = vst.msk [vmem:[%s5703_s20 + $0x70] sm:$0xff] %vm3047_vm4, %v3029_v20  ;;  %v4255_v41 = vadd.f32 %v2897_v39, %v1833_v19 }
 0x1f0   : > { %v3032_v17 = vadd.f32 %v4254_v13, %v5698_v48 }
 0x1f1   : > { %v4017_v61 = vpop.f32.mrb[18].mxu1  ;;  %v3031_v45 = vadd.f32 %v4255_v41, %v5698_v48  ;;  %v4217_v0 = vpop.f32.mrb[18].mxu0 }
 0x1f2   : > { %v1843_v16 = vpop.f32.mrb[19].mxu1  ;;  %3065 = vst.msk [vmem:[%s5703_s20 + $0x88] sm:$0xff] %vm3047_vm4, %v3032_v17  ;;  %v4256_v49 = vadd.f32 %v4217_v0, %v4017_v61  ;;  %v2907_v56 = vpop.f32.mrb[19].mxu0 }
 0x1f3   : > { %3064 = vst.msk [vmem:[%s5703_s20 + $0x80] sm:$0xff] %vm3047_vm4, %v3031_v45  ;;  %v4257_v14 = vadd.f32 %v2907_v56, %v1843_v16 }
 0x1f4   : > { %v3034_v36 = vadd.f32 %v4256_v49, %v5698_v48 }
 0x1f5   : > { %v4020_v33 = vpop.f32.mrb[20].mxu1  ;;  %v3033_v5 = vadd.f32 %v4257_v14, %v5698_v48  ;;  %v4220_v11 = vpop.f32.mrb[20].mxu0 }
 0x1f6   : > { %v1853_v47 = vpop.f32.mrb[21].mxu1  ;;  %3067 = vst.msk [vmem:[%s5703_s20 + $0x98] sm:$0xff] %vm3047_vm4, %v3034_v36  ;;  %v4258_v63 = vadd.f32 %v4220_v11, %v4020_v33  ;;  %v2917_v23 = vpop.f32.mrb[21].mxu0 }
 0x1f7   : > { %3066 = vst.msk [vmem:[%s5703_s20 + $0x90] sm:$0xff] %vm3047_vm4, %v3033_v5  ;;  %v4259_v57 = vadd.f32 %v2917_v23, %v1853_v47 }
 0x1f8   : > { %v3036_v30 = vadd.f32 %v4258_v63, %v5698_v48 }
 0x1f9   : > { %v4023_v38 = vpop.f32.mrb[22].mxu1  ;;  %v3035_v37 = vadd.f32 %v4259_v57, %v5698_v48  ;;  %v4223_v62 = vpop.f32.mrb[22].mxu0 }
 0x1fa   : > { %v1863_v4 = vpop.f32.mrb[23].mxu1  ;;  %3069 = vst.msk [vmem:[%s5703_s20 + $0xa8] sm:$0xff] %vm3047_vm4, %v3036_v30  ;;  %v4260_v35 = vadd.f32 %v4223_v62, %v4023_v38  ;;  %v2927_v44 = vpop.f32.mrb[23].mxu0 }
 0x1fb   : > { %3068 = vst.msk [vmem:[%s5703_s20 + $0xa0] sm:$0xff] %vm3047_vm4, %v3035_v37  ;;  %v4261_v27 = vadd.f32 %v2927_v44, %v1863_v4 }
 0x1fc   : > { %v3038_v2 = vadd.f32 %v4260_v35, %v5698_v48 }
 0x1fd   : > { %v4026_v34 = vpop.f32.mrb[24].mxu1  ;;  %v3037_v60 = vadd.f32 %v4261_v27, %v5698_v48  ;;  %v4226_v1 = vpop.f32.mrb[24].mxu0 }
 0x1fe   : > { %v1873_v15 = vpop.f32.mrb[25].mxu1  ;;  %3071 = vst.msk [vmem:[%s5703_s20 + $0xb8] sm:$0xff] %vm3047_vm4, %v3038_v2  ;;  %v4262_v18 = vadd.f32 %v4226_v1, %v4026_v34  ;;  %v2937_v25 = vpop.f32.mrb[25].mxu0 }
 0x1ff   : > { %3070 = vst.msk [vmem:[%s5703_s20 + $0xb0] sm:$0xff] %vm3047_vm4, %v3037_v60  ;;  %v4263_v31 = vadd.f32 %v2937_v25, %v1873_v15 }
 0x200   : > { %v3040_v32 = vadd.f32 %v4262_v18, %v5698_v48 }
 0x201   : > { %v4029_v42 = vpop.f32.mrb[26].mxu1  ;;  %v3039_v43 = vadd.f32 %v4263_v31, %v5698_v48  ;;  %v4229_v50 = vpop.f32.mrb[26].mxu0 }
 0x202   : > { %v1883_v52 = vpop.f32.mrb[27].mxu1  ;;  %3073 = vst.msk [vmem:[%s5703_s20 + $0xc8] sm:$0xff] %vm3047_vm4, %v3040_v32  ;;  %v4264_v26 = vadd.f32 %v4229_v50, %v4029_v42  ;;  %v2947_v51 = vpop.f32.mrb[27].mxu0 }
 0x203   : > { %3072 = vst.msk [vmem:[%s5703_s20 + $0xc0] sm:$0xff] %vm3047_vm4, %v3039_v43  ;;  %v4265_v46 = vadd.f32 %v2947_v51, %v1883_v52 }
 0x204   : > { %v3042_v9 = vadd.f32 %v4264_v26, %v5698_v48 }
 0x205   : > { %v4032_v6 = vpop.f32.mrb[28].mxu1  ;;  %v3041_v58 = vadd.f32 %v4265_v46, %v5698_v48  ;;  %v4232_v59 = vpop.f32.mrb[28].mxu0 }
 0x206   : > { %v1893_v3 = vpop.f32.mrb[29].mxu1  ;;  %3075 = vst.msk [vmem:[%s5703_s20 + $0xd8] sm:$0xff] %vm3047_vm4, %v3042_v9  ;;  %v4266_v7 = vadd.f32 %v4232_v59, %v4032_v6  ;;  %v2957_v8 = vpop.f32.mrb[29].mxu0 }
 0x207   : > { %3074 = vst.msk [vmem:[%s5703_s20 + $0xd0] sm:$0xff] %vm3047_vm4, %v3041_v58  ;;  %v4267_v22 = vadd.f32 %v2957_v8, %v1893_v3 }
 0x208   : > { %v3044_v28 = vadd.f32 %v4266_v7, %v5698_v48 }
 0x209   : > { %v4035_v29 = vpop.f32.mrb[30].mxu1  ;;  %v3043_v53 = vadd.f32 %v4267_v22, %v5698_v48  ;;  %v4235_v55 = vpop.f32.mrb[30].mxu0 }
 0x20a   : > { %v1903_v21 = vpop.f32.mrb[31].mxu1  ;;  %3077 = vst.msk [vmem:[%s5703_s20 + $0xe8] sm:$0xff] %vm3047_vm4, %v3044_v28  ;;  %v4268_v24 = vadd.f32 %v4235_v55, %v4035_v29  ;;  %v2967_v10 = vpop.f32.mrb[31].mxu0 }
 0x20b   : > { %3076 = vst.msk [vmem:[%s5703_s20 + $0xe0] sm:$0xff] %vm3047_vm4, %v3043_v53  ;;  %v4269_v12 = vadd.f32 %v2967_v10, %v1903_v21 }
 0x20c   : > { %v3046_v40 = vadd.f32 %v4268_v24, %v5698_v48 }
 0x20d   : > { %v3045_v20 = vadd.f32 %v4269_v12, %v5698_v48 }
 0x20e   : > { %3079 = vst.msk [vmem:[%s5703_s20 + $0xf8] sm:$0xff] %vm3047_vm4, %v3046_v40 }
 0x20f   : > { %3078 = vst.msk [vmem:[%s5703_s20 + $0xf0] sm:$0xff] %vm3047_vm4, %v3045_v20 }
 0x210 PF: > { %s13_s14 = sadd.s32 1, %s4541_s14   ;;  %s5989_s12 = smov %s4537_s13 }
 0x211   : > { %p10_p5 = scmp.ge.s32.totalorder %s13_s14, 4   ;;  %s5990_s13 = smov %s5992_s15 }
 0x213   :  { %12 = sbr.rel (!%p10_p5) target bundleno = 2 (0x2), region = 70 }

</bundles_post_ra>
